<compile_context>
chip_gen: v6e
topology: v6e:2x2x1
jax: 0.10.0
libtpu: 0.0.40
codegen_flags: <defaults>
</compile_context>

<pallas_src>
import numpy as np
import jax
import jax.numpy as jnp
from jax.experimental import pallas as pl
from jax.experimental.pallas import tpu as pltpu


def _round_up(x, m):
    return (x + m - 1) // m * m


def _sigmoid_onetanh(x):
    # sigmoid(x) == 0.5 * tanh(0.5 * x) + 0.5  -> one EUP push (vs exp + recip).
    return 0.5 * jnp.tanh(0.5 * x) + 0.5


# ----------------------------- Pallas kernel --------------------------------
def _lstm_recurrence_kernel(emb_ref, h0_ref, c0_ref, wx_ref, wh_ref, bg_ref,
                            h_out_ref, h_s, c_s):
    """One grid step == K consecutive decode timesteps (time-major blocks).

    emb_ref   : (K, Bp, Ep)  embeddings for timesteps [tb*K, tb*K+K)  (mxu dtype)
    h0/c0     : (Bp, Hp)     initial LSTM state (from encoder mean), padded (f32)
    wx_ref    : (Ep, 4*Hp)   pre-transposed input->gate weight        (mxu dtype)
    wh_ref    : (Hp, 4*Hp)   pre-transposed hidden->gate weight       (mxu dtype)
    bg_ref    : (1, 4*Hp)    b_ih + b_hh, gate blocks at Hp stride    (f32)
    h_out_ref : (K, Bp, Hp)  hidden state h_t for each of the K steps (mxu dtype)
    h_s, c_s  : (Bp, Hp)     f32 VMEM scratch carrying state across grid steps
    """
    tb = pl.program_id(0)

    @pl.when(tb == 0)
    def _():
        h_s[...] = h0_ref[...]
        c_s[...] = c0_ref[...]

    h = h_s[...]                                  # (Bp, Hp) f32
    c = c_s[...]
    Hp = h.shape[-1]
    K, Bp, Ep = emb_ref.shape
    wh = wh_ref[...]                              # (Hp, 4Hp)
    mxu_dtype = wh.dtype

    # Input projection for ALL K steps in one large MXU matmul (M = K*Bp rows),
    # bias folded in once -> nothing but the Hp-contraction stays per-step.
    emb2 = emb_ref[...].reshape(K * Bp, Ep)       # free reshape: Bp % 16 == 0
    gx = jnp.dot(emb2, wx_ref[...],
                 preferred_element_type=jnp.float32) + bg_ref[...]  # (K*Bp, 4Hp) f32

    # Sequential recurrence.  Static unroll over the (small) chunk length K.
    # NOTE: at large Hp switch to lax.fori_loop(..., unroll=True) if the bundle
    # dump shows vreg spills from the unrolled live ranges.
    for j in range(K):
        gates = gx[j * Bp:(j + 1) * Bp] + jnp.dot(
            h.astype(mxu_dtype), wh, preferred_element_type=jnp.float32)
        i = _sigmoid_onetanh(gates[:, 0 * Hp:1 * Hp])
        f = _sigmoid_onetanh(gates[:, 1 * Hp:2 * Hp])
        g = jnp.tanh(gates[:, 2 * Hp:3 * Hp])
        o = _sigmoid_onetanh(gates[:, 3 * Hp:4 * Hp])
        c = f * c + i * g
        h = o * jnp.tanh(c)
        h_out_ref[j] = h.astype(h_out_ref.dtype)  # full-tile, unmasked store

    h_s[...] = h
    c_s[...] = c


# ------------------------ one-time parameter repack --------------------------
def prepare_gate_weights(params, mxu_dtype=jnp.bfloat16):
    """Pad / transpose / split the LSTMCell+fc weights into TPU-friendly layout.

    Hoisted out of decoder_lstm_forward so the dynamic-update-slices run once
    per model, not once per decode call.  Gate blocks (i, f, g, o) are placed
    at Hp stride; padded rows/cols are zero, which keeps the padded h/c lanes
    identically zero through the recurrence.
    """
    E = params['embedding'].shape[1]
    Hd = params['W_hh'].shape[1]
    Ep = _round_up(E, 128)
    Hp = _round_up(Hd, 128)
    w_ih = params['W_ih'].astype(jnp.float32)     # (4H, E)
    w_hh = params['W_hh'].astype(jnp.float32)     # (4H, H)
    b_sum = (params['b_ih'] + params['b_hh']).astype(jnp.float32)
    Wx = jnp.zeros((Ep, 4 * Hp), jnp.float32)
    Wh = jnp.zeros((Hp, 4 * Hp), jnp.float32)
    bg = jnp.zeros((1, 4 * Hp), jnp.float32)
    for k in range(4):                            # PyTorch gate order i, f, g, o
        Wx = Wx.at[:E, k * Hp:k * Hp + Hd].set(w_ih[k * Hd:(k + 1) * Hd, :].T)
        Wh = Wh.at[:Hd, k * Hp:k * Hp + Hd].set(w_hh[k * Hd:(k + 1) * Hd, :].T)
        bg = bg.at[0, k * Hp:k * Hp + Hd].set(b_sum[k * Hd:(k + 1) * Hd])
    return {
        'Wx': Wx.astype(mxu_dtype),
        'Wh': Wh.astype(mxu_dtype),
        'bg': bg,                                  # stays f32 (added to f32 gx)
        'W_fc': params['W_fc'].astype(mxu_dtype),
        'E': E, 'H': Hd, 'Ep': Ep, 'Hp': Hp,
        'mxu_dtype': mxu_dtype,
    }


# ------------------------------ wrapper --------------------------------------
def decoder_lstm_forward(params, encoder_out, encoded_captions, caption_lengths,
                         prepared=None, max_decode_len=None, steps_per_block=8):
    if prepared is None:
        prepared = prepare_gate_weights(params)
    mxu_dtype = prepared['mxu_dtype']
    E, Hd, Ep, Hp = prepared['E'], prepared['H'], prepared['Ep'], prepared['Hp']

    B = encoder_out.shape[0]
    Denc = encoder_out.shape[-1]
    enc = encoder_out.reshape(B, -1, Denc)                       # (B, P, Denc)

    cl = caption_lengths.reshape(B)
    sort_ind = jnp.argsort(-cl)          # stable; torch.sort has no tie guarantee
    cl_sorted = cl[sort_ind]
    enc = enc[sort_ind]
    caps_sorted = encoded_captions[sort_ind]

    mean_enc = enc.mean(axis=1)                                  # (B, Denc)
    h0 = mean_enc @ params['W_init_h'].T + params['b_init_h']    # (B, H)
    c0 = mean_enc @ params['W_init_c'].T + params['b_init_c']    # (B, H)

    decode_lengths = (cl_sorted - 1).astype(jnp.int32)
    if max_decode_len is None:
        # Data-dependent host sync (matches PyTorch max(decode_lengths)); pass
        # max_decode_len for a fully static / jittable serving path.
        T_max = int(np.asarray(jnp.max(decode_lengths)))
    else:
        T_max = int(max_decode_len)

    # -------- pad to TPU-friendly tile sizes (time-major for the kernel) -----
    K = steps_per_block                  # raise to 16-32 at production seq lens
    Bp = _round_up(max(B, 16), 16)       # dense sublanes for f32 AND bf16 tiles
    Tp = _round_up(max(T_max, 1), K)

    emb = params['embedding'][caps_sorted[:, :T_max]].astype(mxu_dtype)  # (B,T,E)
    emb_t = jnp.transpose(emb, (1, 0, 2))                                # (T,B,E)
    emb_p = jnp.zeros((Tp, Bp, Ep), mxu_dtype).at[:T_max, :B, :E].set(emb_t)

    h0_p = jnp.zeros((Bp, Hp), jnp.float32).at[:B, :Hd].set(h0.astype(jnp.float32))
    c0_p = jnp.zeros((Bp, Hp), jnp.float32).at[:B, :Hd].set(c0.astype(jnp.float32))

    # Grid-invariant operands: single-buffer (their index_map is constant, so
    # double-buffering would only double resident VMEM — matters on v7x).
    invariant = dict(pipeline_mode=pl.Buffered(1))

    grid_spec = pltpu.PrefetchScalarGridSpec(
        num_scalar_prefetch=0,
        grid=(Tp // K,),
        in_specs=[
            pl.BlockSpec((K, Bp, Ep), lambda t: (t, 0, 0)),               # emb chunk
            pl.BlockSpec((Bp, Hp), lambda t: (0, 0), **invariant),        # h0
            pl.BlockSpec((Bp, Hp), lambda t: (0, 0), **invariant),        # c0
            pl.BlockSpec((Ep, 4 * Hp), lambda t: (0, 0), **invariant),    # Wx
            pl.BlockSpec((Hp, 4 * Hp), lambda t: (0, 0), **invariant),    # Wh
            pl.BlockSpec((1, 4 * Hp), lambda t: (0, 0), **invariant),     # bias
        ],
        out_specs=pl.BlockSpec((K, Bp, Hp), lambda t: (t, 0, 0)),
        scratch_shapes=[pltpu.VMEM((Bp, Hp), jnp.float32),                # h carry
                        pltpu.VMEM((Bp, Hp), jnp.float32)],               # c carry
    )

    # On v7x (2 TensorCores) add a leading "parallel" grid axis over batch
    # halves when B >= 16 to run the recurrence on both cores.
    h_all = pl.pallas_call(
        _lstm_recurrence_kernel,
        out_shape=jax.ShapeDtypeStruct((Tp, Bp, Hp), mxu_dtype),
        grid_spec=grid_spec,
        compiler_params=pltpu.CompilerParams(
            dimension_semantics=("arbitrary",)),      # time axis is sequential
    )(emb_p, h0_p, c0_p, prepared['Wx'], prepared['Wh'], prepared['bg'])

    # FLOP-dominant vocab projection hoisted out of the sequential kernel:
    # one large (T*B, H) @ (H, V) matmul (bf16 operands, f32 accumulation).
    h_seq = h_all[:T_max, :B, :Hd]                                # (T, B, H)
    logits = jnp.einsum('tbh,vh->btv', h_seq, prepared['W_fc'],
                        preferred_element_type=jnp.float32)
    logits = logits + params['b_fc'].astype(jnp.float32)

    # Same semantics as the shrinking-batch loop: rows with decode_lengths <= t
    # never get a prediction written (stay 0); row activity is monotone.
    active = (decode_lengths[:, None] > jnp.arange(T_max))[:, :, None]
    predictions = jnp.where(active, logits, 0.0)
    # TODO(synk): nn.Dropout treated as identity (eval-mode); no RNG dropout here.

    return predictions, caps_sorted, decode_lengths, sort_ind


# --------------------- pure-JAX reference (for checking) ---------------------
def reference_forward(params, encoder_out, encoded_captions, caption_lengths):
    B = encoder_out.shape[0]
    Denc = encoder_out.shape[-1]
    enc = encoder_out.reshape(B, -1, Denc)
    cl = caption_lengths.reshape(B)
    sort_ind = jnp.argsort(-cl)
    cl_sorted = cl[sort_ind]
    enc = enc[sort_ind]
    caps_sorted = encoded_captions[sort_ind]

    embeddings = params['embedding'][caps_sorted]
    mean_enc = enc.mean(axis=1)
    h = mean_enc @ params['W_init_h'].T + params['b_init_h']
    c = mean_enc @ params['W_init_c'].T + params['b_init_c']

    decode_lengths = cl_sorted - 1
    T_max = int(np.asarray(jnp.max(decode_lengths)))
    Hd = h.shape[-1]
    preds_steps = []
    for t in range(T_max):
        x = embeddings[:, t, :]
        gates = (x @ params['W_ih'].T + h @ params['W_hh'].T
                 + params['b_ih'] + params['b_hh'])
        i = jax.nn.sigmoid(gates[:, 0 * Hd:1 * Hd])
        f = jax.nn.sigmoid(gates[:, 1 * Hd:2 * Hd])
        g = jnp.tanh(gates[:, 2 * Hd:3 * Hd])
        o = jax.nn.sigmoid(gates[:, 3 * Hd:4 * Hd])
        c_new = f * c + i * g
        h_new = o * jnp.tanh(c_new)
        active = (decode_lengths > t)[:, None]
        h = jnp.where(active, h_new, h)
        c = jnp.where(active, c_new, c)
        p = h @ params['W_fc'].T + params['b_fc']
        preds_steps.append(jnp.where(active, p, 0.0))
    return jnp.stack(preds_steps, axis=1)


# ----------------------------- param init ------------------------------------
def init_params(key, embed_dim, decoder_dim, vocab_size, encoder_dim):
    ks = jax.random.split(key, 10)
    u = lambda k, shape, a: jax.random.uniform(k, shape, jnp.float32, -a, a)
    H = decoder_dim
    k_lstm = 1.0 / np.sqrt(H)
    k_enc = 1.0 / np.sqrt(encoder_dim)
    return {
        'embedding': u(ks[0], (vocab_size, embed_dim), 0.1),     # uniform(-0.1, 0.1)
        'W_ih': u(ks[1], (4 * H, embed_dim), k_lstm),
        'W_hh': u(ks[2], (4 * H, H), k_lstm),
        'b_ih': u(ks[3], (4 * H,), k_lstm),
        'b_hh': u(ks[4], (4 * H,), k_lstm),
        'W_init_h': u(ks[5], (H, encoder_dim), k_enc),
        'b_init_h': u(ks[6], (H,), k_enc),
        'W_init_c': u(ks[7], (H, encoder_dim), k_enc),
        'b_init_c': u(ks[8], (H,), k_enc),
        'W_fc': u(ks[9], (vocab_size, H), 0.1),                  # uniform(-0.1, 0.1)
        'b_fc': jnp.zeros((vocab_size,), jnp.float32),           # fill_(0)
        # NOTE: f_beta / sigmoid of the PyTorch module are unused in forward().
    }


if __name__ == "__main__":
    key = jax.random.PRNGKey(0)
    B, enc_img, Denc = 4, 4, 64
    E, Hd, V = 32, 32, 128
    Tcap = 8

    kp, ke, kc = jax.random.split(key, 3)
    params = init_params(kp, E, Hd, V, Denc)
    encoder_out = jax.random.normal(ke, (B, enc_img, enc_img, Denc), jnp.float32)
    encoded_captions = jax.random.randint(kc, (B, Tcap), 0, V)
    caption_lengths = jnp.array([[8], [6], [5], [3]], dtype=jnp.int32)

    ref_preds = reference_forward(params, encoder_out, encoded_captions,
                                  caption_lengths)

    # Production path: bf16 MXU operands, f32 gate math / carries / accumulation.
    prep_bf16 = prepare_gate_weights(params, jnp.bfloat16)
    preds, caps_sorted, decode_lengths, sort_ind = decoder_lstm_forward(
        params, encoder_out, encoded_captions, caption_lengths, prepared=prep_bf16)
    jax.block_until_ready(preds)
    np.testing.assert_allclose(np.asarray(preds), np.asarray(ref_preds),
                               rtol=3e-2, atol=3e-2)

    # Exact-parity path (f32 MXU operands) with tight tolerance.
    prep_f32 = prepare_gate_weights(params, jnp.float32)
    preds32, _, _, _ = decoder_lstm_forward(
        params, encoder_out, encoded_captions, caption_lengths, prepared=prep_f32)
    jax.block_until_ready(preds32)
    np.testing.assert_allclose(np.asarray(preds32), np.asarray(ref_preds),
                               rtol=1e-4, atol=1e-4)

    print("KERNEL_OK")
</pallas_src>

<mosaic_0001>
module attributes {stable_mosaic.version = 11 : i64} {
  func.func @_lstm_recurrence_kernel(%arg0: i32, %arg1: memref<8x16x128xbf16, #tpu.memory_space<vmem>>, %arg2: memref<16x128xf32, #tpu.memory_space<vmem>>, %arg3: memref<16x128xf32, #tpu.memory_space<vmem>>, %arg4: memref<128x512xbf16, #tpu.memory_space<vmem>>, %arg5: memref<128x512xbf16, #tpu.memory_space<vmem>>, %arg6: memref<1x512xf32, #tpu.memory_space<vmem>>, %arg7: memref<8x16x128xbf16, #tpu.memory_space<vmem>>, %arg8: memref<16x128xf32, #tpu.memory_space<vmem>>, %arg9: memref<16x128xf32, #tpu.memory_space<vmem>>) attributes {dimension_semantics = [#tpu.dimension_semantics<arbitrary>], iteration_bounds = array<i64: 1>, scalar_prefetch = 0 : i64, scratch_operands = 2 : i64, tpu.core_type = #tpu.core_type<tc>, window_params = [{transform_indices = @transform_0, window_bounds = array<i64: 8, 16, 128>}, {pipeline_mode = #tpu.pipeline_mode<synchronous>, transform_indices = @transform_1, window_bounds = array<i64: 16, 128>}, {pipeline_mode = #tpu.pipeline_mode<synchronous>, transform_indices = @transform_2, window_bounds = array<i64: 16, 128>}, {pipeline_mode = #tpu.pipeline_mode<synchronous>, transform_indices = @transform_3, window_bounds = array<i64: 128, 512>}, {pipeline_mode = #tpu.pipeline_mode<synchronous>, transform_indices = @transform_4, window_bounds = array<i64: 128, 512>}, {pipeline_mode = #tpu.pipeline_mode<synchronous>, transform_indices = @transform_5, window_bounds = array<i64: 1, 512>}, {transform_indices = @transform_6, window_bounds = array<i64: 8, 16, 128>}]} {
    %c0_i32 = arith.constant 0 : i32
    %0 = arith.cmpi eq, %arg0, %c0_i32 : i32
    %1 = arith.extui %0 : i1 to i32
    %c0_i32_0 = arith.constant 0 : i32
    %2 = arith.cmpi ne, %1, %c0_i32_0 : i32
    scf.if %2 {
      %c0_114 = arith.constant 0 : index
      %c0_115 = arith.constant 0 : index
      %327 = vector.load %arg2[%c0_114, %c0_115] : memref<16x128xf32, #tpu.memory_space<vmem>>, vector<16x128xf32>
      %c0_116 = arith.constant 0 : index
      %c0_117 = arith.constant 0 : index
      %328 = vector.load %arg8[%c0_116, %c0_117] : memref<16x128xf32, #tpu.memory_space<vmem>>, vector<16x128xf32>
      tpu.vector_store %arg8[%c0_116, %c0_117], %327 {strides = array<i32>} : memref<16x128xf32, #tpu.memory_space<vmem>>, vector<16x128xf32>,
      %c0_118 = arith.constant 0 : index
      %c0_119 = arith.constant 0 : index
      %329 = vector.load %arg3[%c0_118, %c0_119] : memref<16x128xf32, #tpu.memory_space<vmem>>, vector<16x128xf32>
      %c0_120 = arith.constant 0 : index
      %c0_121 = arith.constant 0 : index
      %330 = vector.load %arg9[%c0_120, %c0_121] : memref<16x128xf32, #tpu.memory_space<vmem>>, vector<16x128xf32>
      tpu.vector_store %arg9[%c0_120, %c0_121], %329 {strides = array<i32>} : memref<16x128xf32, #tpu.memory_space<vmem>>, vector<16x128xf32>,
    } else {
    }
    %c0 = arith.constant 0 : index
    %c0_1 = arith.constant 0 : index
    %3 = vector.load %arg8[%c0, %c0_1] : memref<16x128xf32, #tpu.memory_space<vmem>>, vector<16x128xf32>
    %c0_2 = arith.constant 0 : index
    %c0_3 = arith.constant 0 : index
    %4 = vector.load %arg9[%c0_2, %c0_3] : memref<16x128xf32, #tpu.memory_space<vmem>>, vector<16x128xf32>
    %c0_4 = arith.constant 0 : index
    %c0_5 = arith.constant 0 : index
    %5 = vector.load %arg5[%c0_4, %c0_5] : memref<128x512xbf16, #tpu.memory_space<vmem>>, vector<128x512xbf16>
    %c0_6 = arith.constant 0 : index
    %c0_7 = arith.constant 0 : index
    %c0_8 = arith.constant 0 : index
    %6 = vector.load %arg1[%c0_6, %c0_7, %c0_8] : memref<8x16x128xbf16, #tpu.memory_space<vmem>>, vector<8x16x128xbf16>
    %7 = vector.shape_cast %6 : vector<8x16x128xbf16> to vector<128x128xbf16>
    %c0_9 = arith.constant 0 : index
    %c0_10 = arith.constant 0 : index
    %8 = vector.load %arg4[%c0_9, %c0_10] : memref<128x512xbf16, #tpu.memory_space<vmem>>, vector<128x512xbf16>
    %cst = arith.constant dense<0.000000e+00> : vector<128x512xf32>
    %9 = tpu.matmul %7, %8, %cst {dimension_numbers = #tpu.dot_dimension_numbers<[1], [0], [0], [1], [0, 0, 1, 1], [], []>} : vector<128x128xbf16>, vector<128x512xbf16>, vector<128x512xf32> -> vector<128x512xf32>
    %c0_11 = arith.constant 0 : index
    %c0_12 = arith.constant 0 : index
    %10 = vector.load %arg6[%c0_11, %c0_12] : memref<1x512xf32, #tpu.memory_space<vmem>>, vector<1x512xf32>
    %11 = vector.broadcast %10 : vector<1x512xf32> to vector<128x512xf32>
    %12 = arith.addf %9, %11 : vector<128x512xf32>
    %13 = vector.extract_strided_slice %12 {offsets = [0, 0], sizes = [16, 512], strides = [1, 1]} : vector<128x512xf32> to vector<16x512xf32>
    %14 = arith.truncf %3 : vector<16x128xf32> to vector<16x128xbf16>
    %cst_13 = arith.constant dense<0.000000e+00> : vector<16x512xf32>
    %15 = tpu.matmul %14, %5, %cst_13 {dimension_numbers = #tpu.dot_dimension_numbers<[1], [0], [0], [1], [0, 0, 1, 1], [], []>} : vector<16x128xbf16>, vector<128x512xbf16>, vector<16x512xf32> -> vector<16x512xf32>
    %16 = arith.addf %13, %15 : vector<16x512xf32>
    %17 = vector.extract_strided_slice %16 {offsets = [0, 0], sizes = [16, 128], strides = [1, 1]} : vector<16x512xf32> to vector<16x128xf32>
    %cst_14 = arith.constant 5.000000e-01 : f32
    %18 = vector.broadcast %cst_14 : f32 to vector<16x128xf32>
    %19 = arith.mulf %18, %17 : vector<16x128xf32>
    %20 = math.tanh %19 : vector<16x128xf32>
    %cst_15 = arith.constant 5.000000e-01 : f32
    %21 = vector.broadcast %cst_15 : f32 to vector<16x128xf32>
    %22 = arith.mulf %21, %20 : vector<16x128xf32>
    %cst_16 = arith.constant 5.000000e-01 : f32
    %23 = vector.broadcast %cst_16 : f32 to vector<16x128xf32>
    %24 = arith.addf %22, %23 : vector<16x128xf32>
    %25 = vector.extract_strided_slice %16 {offsets = [0, 128], sizes = [16, 128], strides = [1, 1]} : vector<16x512xf32> to vector<16x128xf32>
    %cst_17 = arith.constant 5.000000e-01 : f32
    %26 = vector.broadcast %cst_17 : f32 to vector<16x128xf32>
    %27 = arith.mulf %26, %25 : vector<16x128xf32>
    %28 = math.tanh %27 : vector<16x128xf32>
    %cst_18 = arith.constant 5.000000e-01 : f32
    %29 = vector.broadcast %cst_18 : f32 to vector<16x128xf32>
    %30 = arith.mulf %29, %28 : vector<16x128xf32>
    %cst_19 = arith.constant 5.000000e-01 : f32
    %31 = vector.broadcast %cst_19 : f32 to vector<16x128xf32>
    %32 = arith.addf %30, %31 : vector<16x128xf32>
    %33 = vector.extract_strided_slice %16 {offsets = [0, 256], sizes = [16, 128], strides = [1, 1]} : vector<16x512xf32> to vector<16x128xf32>
    %34 = math.tanh %33 : vector<16x128xf32>
    %35 = vector.extract_strided_slice %16 {offsets = [0, 384], sizes = [16, 128], strides = [1, 1]} : vector<16x512xf32> to vector<16x128xf32>
    %cst_20 = arith.constant 5.000000e-01 : f32
    %36 = vector.broadcast %cst_20 : f32 to vector<16x128xf32>
    %37 = arith.mulf %36, %35 : vector<16x128xf32>
    %38 = math.tanh %37 : vector<16x128xf32>
    %cst_21 = arith.constant 5.000000e-01 : f32
    %39 = vector.broadcast %cst_21 : f32 to vector<16x128xf32>
    %40 = arith.mulf %39, %38 : vector<16x128xf32>
    %cst_22 = arith.constant 5.000000e-01 : f32
    %41 = vector.broadcast %cst_22 : f32 to vector<16x128xf32>
    %42 = arith.addf %40, %41 : vector<16x128xf32>
    %43 = arith.mulf %32, %4 : vector<16x128xf32>
    %44 = arith.mulf %24, %34 : vector<16x128xf32>
    %45 = arith.addf %43, %44 : vector<16x128xf32>
    %46 = math.tanh %45 : vector<16x128xf32>
    %47 = arith.mulf %42, %46 : vector<16x128xf32>
    %48 = arith.truncf %47 : vector<16x128xf32> to vector<16x128xbf16>
    %c0_23 = arith.constant 0 : index
    %c0_24 = arith.constant 0 : index
    %c0_25 = arith.constant 0 : index
    %49 = vector.load %arg7[%c0_23, %c0_24, %c0_25] : memref<8x16x128xbf16, #tpu.memory_space<vmem>>, vector<1x16x128xbf16>
    %50 = vector.shape_cast %49 : vector<1x16x128xbf16> to vector<16x128xbf16>
    %51 = vector.shape_cast %48 : vector<16x128xbf16> to vector<1x16x128xbf16>
    tpu.vector_store %arg7[%c0_23, %c0_24, %c0_25], %51 {strides = array<i32>} : memref<8x16x128xbf16, #tpu.memory_space<vmem>>, vector<1x16x128xbf16>,
    %52 = vector.extract_strided_slice %12 {offsets = [16, 0], sizes = [16, 512], strides = [1, 1]} : vector<128x512xf32> to vector<16x512xf32>
    %53 = arith.truncf %47 : vector<16x128xf32> to vector<16x128xbf16>
    %cst_26 = arith.constant dense<0.000000e+00> : vector<16x512xf32>
    %54 = tpu.matmul %53, %5, %cst_26 {dimension_numbers = #tpu.dot_dimension_numbers<[1], [0], [0], [1], [0, 0, 1, 1], [], []>} : vector<16x128xbf16>, vector<128x512xbf16>, vector<16x512xf32> -> vector<16x512xf32>
    %55 = arith.addf %52, %54 : vector<16x512xf32>
    %56 = vector.extract_strided_slice %55 {offsets = [0, 0], sizes = [16, 128], strides = [1, 1]} : vector<16x512xf32> to vector<16x128xf32>
    %cst_27 = arith.constant 5.000000e-01 : f32
    %57 = vector.broadcast %cst_27 : f32 to vector<16x128xf32>
    %58 = arith.mulf %57, %56 : vector<16x128xf32>
    %59 = math.tanh %58 : vector<16x128xf32>
    %cst_28 = arith.constant 5.000000e-01 : f32
    %60 = vector.broadcast %cst_28 : f32 to vector<16x128xf32>
    %61 = arith.mulf %60, %59 : vector<16x128xf32>
    %cst_29 = arith.constant 5.000000e-01 : f32
    %62 = vector.broadcast %cst_29 : f32 to vector<16x128xf32>
    %63 = arith.addf %61, %62 : vector<16x128xf32>
    %64 = vector.extract_strided_slice %55 {offsets = [0, 128], sizes = [16, 128], strides = [1, 1]} : vector<16x512xf32> to vector<16x128xf32>
    %cst_30 = arith.constant 5.000000e-01 : f32
    %65 = vector.broadcast %cst_30 : f32 to vector<16x128xf32>
    %66 = arith.mulf %65, %64 : vector<16x128xf32>
    %67 = math.tanh %66 : vector<16x128xf32>
    %cst_31 = arith.constant 5.000000e-01 : f32
    %68 = vector.broadcast %cst_31 : f32 to vector<16x128xf32>
    %69 = arith.mulf %68, %67 : vector<16x128xf32>
    %cst_32 = arith.constant 5.000000e-01 : f32
    %70 = vector.broadcast %cst_32 : f32 to vector<16x128xf32>
    %71 = arith.addf %69, %70 : vector<16x128xf32>
    %72 = vector.extract_strided_slice %55 {offsets = [0, 256], sizes = [16, 128], strides = [1, 1]} : vector<16x512xf32> to vector<16x128xf32>
    %73 = math.tanh %72 : vector<16x128xf32>
    %74 = vector.extract_strided_slice %55 {offsets = [0, 384], sizes = [16, 128], strides = [1, 1]} : vector<16x512xf32> to vector<16x128xf32>
    %cst_33 = arith.constant 5.000000e-01 : f32
    %75 = vector.broadcast %cst_33 : f32 to vector<16x128xf32>
    %76 = arith.mulf %75, %74 : vector<16x128xf32>
    %77 = math.tanh %76 : vector<16x128xf32>
    %cst_34 = arith.constant 5.000000e-01 : f32
    %78 = vector.broadcast %cst_34 : f32 to vector<16x128xf32>
    %79 = arith.mulf %78, %77 : vector<16x128xf32>
    %cst_35 = arith.constant 5.000000e-01 : f32
    %80 = vector.broadcast %cst_35 : f32 to vector<16x128xf32>
    %81 = arith.addf %79, %80 : vector<16x128xf32>
    %82 = arith.mulf %71, %45 : vector<16x128xf32>
    %83 = arith.mulf %63, %73 : vector<16x128xf32>
    %84 = arith.addf %82, %83 : vector<16x128xf32>
    %85 = math.tanh %84 : vector<16x128xf32>
    %86 = arith.mulf %81, %85 : vector<16x128xf32>
    %87 = arith.truncf %86 : vector<16x128xf32> to vector<16x128xbf16>
    %c1 = arith.constant 1 : index
    %c0_36 = arith.constant 0 : index
    %c0_37 = arith.constant 0 : index
    %88 = vector.load %arg7[%c1, %c0_36, %c0_37] : memref<8x16x128xbf16, #tpu.memory_space<vmem>>, vector<1x16x128xbf16>
    %89 = vector.shape_cast %88 : vector<1x16x128xbf16> to vector<16x128xbf16>
    %90 = vector.shape_cast %87 : vector<16x128xbf16> to vector<1x16x128xbf16>
    tpu.vector_store %arg7[%c1, %c0_36, %c0_37], %90 {strides = array<i32>} : memref<8x16x128xbf16, #tpu.memory_space<vmem>>, vector<1x16x128xbf16>,
    %91 = vector.extract_strided_slice %12 {offsets = [32, 0], sizes = [16, 512], strides = [1, 1]} : vector<128x512xf32> to vector<16x512xf32>
    %92 = arith.truncf %86 : vector<16x128xf32> to vector<16x128xbf16>
    %cst_38 = arith.constant dense<0.000000e+00> : vector<16x512xf32>
    %93 = tpu.matmul %92, %5, %cst_38 {dimension_numbers = #tpu.dot_dimension_numbers<[1], [0], [0], [1], [0, 0, 1, 1], [], []>} : vector<16x128xbf16>, vector<128x512xbf16>, vector<16x512xf32> -> vector<16x512xf32>
    %94 = arith.addf %91, %93 : vector<16x512xf32>
    %95 = vector.extract_strided_slice %94 {offsets = [0, 0], sizes = [16, 128], strides = [1, 1]} : vector<16x512xf32> to vector<16x128xf32>
    %cst_39 = arith.constant 5.000000e-01 : f32
    %96 = vector.broadcast %cst_39 : f32 to vector<16x128xf32>
    %97 = arith.mulf %96, %95 : vector<16x128xf32>
    %98 = math.tanh %97 : vector<16x128xf32>
    %cst_40 = arith.constant 5.000000e-01 : f32
    %99 = vector.broadcast %cst_40 : f32 to vector<16x128xf32>
    %100 = arith.mulf %99, %98 : vector<16x128xf32>
    %cst_41 = arith.constant 5.000000e-01 : f32
    %101 = vector.broadcast %cst_41 : f32 to vector<16x128xf32>
    %102 = arith.addf %100, %101 : vector<16x128xf32>
    %103 = vector.extract_strided_slice %94 {offsets = [0, 128], sizes = [16, 128], strides = [1, 1]} : vector<16x512xf32> to vector<16x128xf32>
    %cst_42 = arith.constant 5.000000e-01 : f32
    %104 = vector.broadcast %cst_42 : f32 to vector<16x128xf32>
    %105 = arith.mulf %104, %103 : vector<16x128xf32>
    %106 = math.tanh %105 : vector<16x128xf32>
    %cst_43 = arith.constant 5.000000e-01 : f32
    %107 = vector.broadcast %cst_43 : f32 to vector<16x128xf32>
    %108 = arith.mulf %107, %106 : vector<16x128xf32>
    %cst_44 = arith.constant 5.000000e-01 : f32
    %109 = vector.broadcast %cst_44 : f32 to vector<16x128xf32>
    %110 = arith.addf %108, %109 : vector<16x128xf32>
    %111 = vector.extract_strided_slice %94 {offsets = [0, 256], sizes = [16, 128], strides = [1, 1]} : vector<16x512xf32> to vector<16x128xf32>
    %112 = math.tanh %111 : vector<16x128xf32>
    %113 = vector.extract_strided_slice %94 {offsets = [0, 384], sizes = [16, 128], strides = [1, 1]} : vector<16x512xf32> to vector<16x128xf32>
    %cst_45 = arith.constant 5.000000e-01 : f32
    %114 = vector.broadcast %cst_45 : f32 to vector<16x128xf32>
    %115 = arith.mulf %114, %113 : vector<16x128xf32>
    %116 = math.tanh %115 : vector<16x128xf32>
    %cst_46 = arith.constant 5.000000e-01 : f32
    %117 = vector.broadcast %cst_46 : f32 to vector<16x128xf32>
    %118 = arith.mulf %117, %116 : vector<16x128xf32>
    %cst_47 = arith.constant 5.000000e-01 : f32
    %119 = vector.broadcast %cst_47 : f32 to vector<16x128xf32>
    %120 = arith.addf %118, %119 : vector<16x128xf32>
    %121 = arith.mulf %110, %84 : vector<16x128xf32>
    %122 = arith.mulf %102, %112 : vector<16x128xf32>
    %123 = arith.addf %121, %122 : vector<16x128xf32>
    %124 = math.tanh %123 : vector<16x128xf32>
    %125 = arith.mulf %120, %124 : vector<16x128xf32>
    %126 = arith.truncf %125 : vector<16x128xf32> to vector<16x128xbf16>
    %c2 = arith.constant 2 : index
    %c0_48 = arith.constant 0 : index
    %c0_49 = arith.constant 0 : index
    %127 = vector.load %arg7[%c2, %c0_48, %c0_49] : memref<8x16x128xbf16, #tpu.memory_space<vmem>>, vector<1x16x128xbf16>
    %128 = vector.shape_cast %127 : vector<1x16x128xbf16> to vector<16x128xbf16>
    %129 = vector.shape_cast %126 : vector<16x128xbf16> to vector<1x16x128xbf16>
    tpu.vector_store %arg7[%c2, %c0_48, %c0_49], %129 {strides = array<i32>} : memref<8x16x128xbf16, #tpu.memory_space<vmem>>, vector<1x16x128xbf16>,
    %130 = vector.extract_strided_slice %12 {offsets = [48, 0], sizes = [16, 512], strides = [1, 1]} : vector<128x512xf32> to vector<16x512xf32>
    %131 = arith.truncf %125 : vector<16x128xf32> to vector<16x128xbf16>
    %cst_50 = arith.constant dense<0.000000e+00> : vector<16x512xf32>
    %132 = tpu.matmul %131, %5, %cst_50 {dimension_numbers = #tpu.dot_dimension_numbers<[1], [0], [0], [1], [0, 0, 1, 1], [], []>} : vector<16x128xbf16>, vector<128x512xbf16>, vector<16x512xf32> -> vector<16x512xf32>
    %133 = arith.addf %130, %132 : vector<16x512xf32>
    %134 = vector.extract_strided_slice %133 {offsets = [0, 0], sizes = [16, 128], strides = [1, 1]} : vector<16x512xf32> to vector<16x128xf32>
    %cst_51 = arith.constant 5.000000e-01 : f32
    %135 = vector.broadcast %cst_51 : f32 to vector<16x128xf32>
    %136 = arith.mulf %135, %134 : vector<16x128xf32>
    %137 = math.tanh %136 : vector<16x128xf32>
    %cst_52 = arith.constant 5.000000e-01 : f32
    %138 = vector.broadcast %cst_52 : f32 to vector<16x128xf32>
    %139 = arith.mulf %138, %137 : vector<16x128xf32>
    %cst_53 = arith.constant 5.000000e-01 : f32
    %140 = vector.broadcast %cst_53 : f32 to vector<16x128xf32>
    %141 = arith.addf %139, %140 : vector<16x128xf32>
    %142 = vector.extract_strided_slice %133 {offsets = [0, 128], sizes = [16, 128], strides = [1, 1]} : vector<16x512xf32> to vector<16x128xf32>
    %cst_54 = arith.constant 5.000000e-01 : f32
    %143 = vector.broadcast %cst_54 : f32 to vector<16x128xf32>
    %144 = arith.mulf %143, %142 : vector<16x128xf32>
    %145 = math.tanh %144 : vector<16x128xf32>
    %cst_55 = arith.constant 5.000000e-01 : f32
    %146 = vector.broadcast %cst_55 : f32 to vector<16x128xf32>
    %147 = arith.mulf %146, %145 : vector<16x128xf32>
    %cst_56 = arith.constant 5.000000e-01 : f32
    %148 = vector.broadcast %cst_56 : f32 to vector<16x128xf32>
    %149 = arith.addf %147, %148 : vector<16x128xf32>
    %150 = vector.extract_strided_slice %133 {offsets = [0, 256], sizes = [16, 128], strides = [1, 1]} : vector<16x512xf32> to vector<16x128xf32>
    %151 = math.tanh %150 : vector<16x128xf32>
    %152 = vector.extract_strided_slice %133 {offsets = [0, 384], sizes = [16, 128], strides = [1, 1]} : vector<16x512xf32> to vector<16x128xf32>
    %cst_57 = arith.constant 5.000000e-01 : f32
    %153 = vector.broadcast %cst_57 : f32 to vector<16x128xf32>
    %154 = arith.mulf %153, %152 : vector<16x128xf32>
    %155 = math.tanh %154 : vector<16x128xf32>
    %cst_58 = arith.constant 5.000000e-01 : f32
    %156 = vector.broadcast %cst_58 : f32 to vector<16x128xf32>
    %157 = arith.mulf %156, %155 : vector<16x128xf32>
    %cst_59 = arith.constant 5.000000e-01 : f32
    %158 = vector.broadcast %cst_59 : f32 to vector<16x128xf32>
    %159 = arith.addf %157, %158 : vector<16x128xf32>
    %160 = arith.mulf %149, %123 : vector<16x128xf32>
    %161 = arith.mulf %141, %151 : vector<16x128xf32>
    %162 = arith.addf %160, %161 : vector<16x128xf32>
    %163 = math.tanh %162 : vector<16x128xf32>
    %164 = arith.mulf %159, %163 : vector<16x128xf32>
    %165 = arith.truncf %164 : vector<16x128xf32> to vector<16x128xbf16>
    %c3 = arith.constant 3 : index
    %c0_60 = arith.constant 0 : index
    %c0_61 = arith.constant 0 : index
    %166 = vector.load %arg7[%c3, %c0_60, %c0_61] : memref<8x16x128xbf16, #tpu.memory_space<vmem>>, vector<1x16x128xbf16>
    %167 = vector.shape_cast %166 : vector<1x16x128xbf16> to vector<16x128xbf16>
    %168 = vector.shape_cast %165 : vector<16x128xbf16> to vector<1x16x128xbf16>
    tpu.vector_store %arg7[%c3, %c0_60, %c0_61], %168 {strides = array<i32>} : memref<8x16x128xbf16, #tpu.memory_space<vmem>>, vector<1x16x128xbf16>,
    %169 = vector.extract_strided_slice %12 {offsets = [64, 0], sizes = [16, 512], strides = [1, 1]} : vector<128x512xf32> to vector<16x512xf32>
    %170 = arith.truncf %164 : vector<16x128xf32> to vector<16x128xbf16>
    %cst_62 = arith.constant dense<0.000000e+00> : vector<16x512xf32>
    %171 = tpu.matmul %170, %5, %cst_62 {dimension_numbers = #tpu.dot_dimension_numbers<[1], [0], [0], [1], [0, 0, 1, 1], [], []>} : vector<16x128xbf16>, vector<128x512xbf16>, vector<16x512xf32> -> vector<16x512xf32>
    %172 = arith.addf %169, %171 : vector<16x512xf32>
    %173 = vector.extract_strided_slice %172 {offsets = [0, 0], sizes = [16, 128], strides = [1, 1]} : vector<16x512xf32> to vector<16x128xf32>
    %cst_63 = arith.constant 5.000000e-01 : f32
    %174 = vector.broadcast %cst_63 : f32 to vector<16x128xf32>
    %175 = arith.mulf %174, %173 : vector<16x128xf32>
    %176 = math.tanh %175 : vector<16x128xf32>
    %cst_64 = arith.constant 5.000000e-01 : f32
    %177 = vector.broadcast %cst_64 : f32 to vector<16x128xf32>
    %178 = arith.mulf %177, %176 : vector<16x128xf32>
    %cst_65 = arith.constant 5.000000e-01 : f32
    %179 = vector.broadcast %cst_65 : f32 to vector<16x128xf32>
    %180 = arith.addf %178, %179 : vector<16x128xf32>
    %181 = vector.extract_strided_slice %172 {offsets = [0, 128], sizes = [16, 128], strides = [1, 1]} : vector<16x512xf32> to vector<16x128xf32>
    %cst_66 = arith.constant 5.000000e-01 : f32
    %182 = vector.broadcast %cst_66 : f32 to vector<16x128xf32>
    %183 = arith.mulf %182, %181 : vector<16x128xf32>
    %184 = math.tanh %183 : vector<16x128xf32>
    %cst_67 = arith.constant 5.000000e-01 : f32
    %185 = vector.broadcast %cst_67 : f32 to vector<16x128xf32>
    %186 = arith.mulf %185, %184 : vector<16x128xf32>
    %cst_68 = arith.constant 5.000000e-01 : f32
    %187 = vector.broadcast %cst_68 : f32 to vector<16x128xf32>
    %188 = arith.addf %186, %187 : vector<16x128xf32>
    %189 = vector.extract_strided_slice %172 {offsets = [0, 256], sizes = [16, 128], strides = [1, 1]} : vector<16x512xf32> to vector<16x128xf32>
    %190 = math.tanh %189 : vector<16x128xf32>
    %191 = vector.extract_strided_slice %172 {offsets = [0, 384], sizes = [16, 128], strides = [1, 1]} : vector<16x512xf32> to vector<16x128xf32>
    %cst_69 = arith.constant 5.000000e-01 : f32
    %192 = vector.broadcast %cst_69 : f32 to vector<16x128xf32>
    %193 = arith.mulf %192, %191 : vector<16x128xf32>
    %194 = math.tanh %193 : vector<16x128xf32>
    %cst_70 = arith.constant 5.000000e-01 : f32
    %195 = vector.broadcast %cst_70 : f32 to vector<16x128xf32>
    %196 = arith.mulf %195, %194 : vector<16x128xf32>
    %cst_71 = arith.constant 5.000000e-01 : f32
    %197 = vector.broadcast %cst_71 : f32 to vector<16x128xf32>
    %198 = arith.addf %196, %197 : vector<16x128xf32>
    %199 = arith.mulf %188, %162 : vector<16x128xf32>
    %200 = arith.mulf %180, %190 : vector<16x128xf32>
    %201 = arith.addf %199, %200 : vector<16x128xf32>
    %202 = math.tanh %201 : vector<16x128xf32>
    %203 = arith.mulf %198, %202 : vector<16x128xf32>
    %204 = arith.truncf %203 : vector<16x128xf32> to vector<16x128xbf16>
    %c4 = arith.constant 4 : index
    %c0_72 = arith.constant 0 : index
    %c0_73 = arith.constant 0 : index
    %205 = vector.load %arg7[%c4, %c0_72, %c0_73] : memref<8x16x128xbf16, #tpu.memory_space<vmem>>, vector<1x16x128xbf16>
    %206 = vector.shape_cast %205 : vector<1x16x128xbf16> to vector<16x128xbf16>
    %207 = vector.shape_cast %204 : vector<16x128xbf16> to vector<1x16x128xbf16>
    tpu.vector_store %arg7[%c4, %c0_72, %c0_73], %207 {strides = array<i32>} : memref<8x16x128xbf16, #tpu.memory_space<vmem>>, vector<1x16x128xbf16>,
    %208 = vector.extract_strided_slice %12 {offsets = [80, 0], sizes = [16, 512], strides = [1, 1]} : vector<128x512xf32> to vector<16x512xf32>
    %209 = arith.truncf %203 : vector<16x128xf32> to vector<16x128xbf16>
    %cst_74 = arith.constant dense<0.000000e+00> : vector<16x512xf32>
    %210 = tpu.matmul %209, %5, %cst_74 {dimension_numbers = #tpu.dot_dimension_numbers<[1], [0], [0], [1], [0, 0, 1, 1], [], []>} : vector<16x128xbf16>, vector<128x512xbf16>, vector<16x512xf32> -> vector<16x512xf32>
    %211 = arith.addf %208, %210 : vector<16x512xf32>
    %212 = vector.extract_strided_slice %211 {offsets = [0, 0], sizes = [16, 128], strides = [1, 1]} : vector<16x512xf32> to vector<16x128xf32>
    %cst_75 = arith.constant 5.000000e-01 : f32
    %213 = vector.broadcast %cst_75 : f32 to vector<16x128xf32>
    %214 = arith.mulf %213, %212 : vector<16x128xf32>
    %215 = math.tanh %214 : vector<16x128xf32>
    %cst_76 = arith.constant 5.000000e-01 : f32
    %216 = vector.broadcast %cst_76 : f32 to vector<16x128xf32>
    %217 = arith.mulf %216, %215 : vector<16x128xf32>
    %cst_77 = arith.constant 5.000000e-01 : f32
    %218 = vector.broadcast %cst_77 : f32 to vector<16x128xf32>
    %219 = arith.addf %217, %218 : vector<16x128xf32>
    %220 = vector.extract_strided_slice %211 {offsets = [0, 128], sizes = [16, 128], strides = [1, 1]} : vector<16x512xf32> to vector<16x128xf32>
    %cst_78 = arith.constant 5.000000e-01 : f32
    %221 = vector.broadcast %cst_78 : f32 to vector<16x128xf32>
    %222 = arith.mulf %221, %220 : vector<16x128xf32>
    %223 = math.tanh %222 : vector<16x128xf32>
    %cst_79 = arith.constant 5.000000e-01 : f32
    %224 = vector.broadcast %cst_79 : f32 to vector<16x128xf32>
    %225 = arith.mulf %224, %223 : vector<16x128xf32>
    %cst_80 = arith.constant 5.000000e-01 : f32
    %226 = vector.broadcast %cst_80 : f32 to vector<16x128xf32>
    %227 = arith.addf %225, %226 : vector<16x128xf32>
    %228 = vector.extract_strided_slice %211 {offsets = [0, 256], sizes = [16, 128], strides = [1, 1]} : vector<16x512xf32> to vector<16x128xf32>
    %229 = math.tanh %228 : vector<16x128xf32>
    %230 = vector.extract_strided_slice %211 {offsets = [0, 384], sizes = [16, 128], strides = [1, 1]} : vector<16x512xf32> to vector<16x128xf32>
    %cst_81 = arith.constant 5.000000e-01 : f32
    %231 = vector.broadcast %cst_81 : f32 to vector<16x128xf32>
    %232 = arith.mulf %231, %230 : vector<16x128xf32>
    %233 = math.tanh %232 : vector<16x128xf32>
    %cst_82 = arith.constant 5.000000e-01 : f32
    %234 = vector.broadcast %cst_82 : f32 to vector<16x128xf32>
    %235 = arith.mulf %234, %233 : vector<16x128xf32>
    %cst_83 = arith.constant 5.000000e-01 : f32
    %236 = vector.broadcast %cst_83 : f32 to vector<16x128xf32>
    %237 = arith.addf %235, %236 : vector<16x128xf32>
    %238 = arith.mulf %227, %201 : vector<16x128xf32>
    %239 = arith.mulf %219, %229 : vector<16x128xf32>
    %240 = arith.addf %238, %239 : vector<16x128xf32>
    %241 = math.tanh %240 : vector<16x128xf32>
    %242 = arith.mulf %237, %241 : vector<16x128xf32>
    %243 = arith.truncf %242 : vector<16x128xf32> to vector<16x128xbf16>
    %c5 = arith.constant 5 : index
    %c0_84 = arith.constant 0 : index
    %c0_85 = arith.constant 0 : index
    %244 = vector.load %arg7[%c5, %c0_84, %c0_85] : memref<8x16x128xbf16, #tpu.memory_space<vmem>>, vector<1x16x128xbf16>
    %245 = vector.shape_cast %244 : vector<1x16x128xbf16> to vector<16x128xbf16>
    %246 = vector.shape_cast %243 : vector<16x128xbf16> to vector<1x16x128xbf16>
    tpu.vector_store %arg7[%c5, %c0_84, %c0_85], %246 {strides = array<i32>} : memref<8x16x128xbf16, #tpu.memory_space<vmem>>, vector<1x16x128xbf16>,
    %247 = vector.extract_strided_slice %12 {offsets = [96, 0], sizes = [16, 512], strides = [1, 1]} : vector<128x512xf32> to vector<16x512xf32>
    %248 = arith.truncf %242 : vector<16x128xf32> to vector<16x128xbf16>
    %cst_86 = arith.constant dense<0.000000e+00> : vector<16x512xf32>
    %249 = tpu.matmul %248, %5, %cst_86 {dimension_numbers = #tpu.dot_dimension_numbers<[1], [0], [0], [1], [0, 0, 1, 1], [], []>} : vector<16x128xbf16>, vector<128x512xbf16>, vector<16x512xf32> -> vector<16x512xf32>
    %250 = arith.addf %247, %249 : vector<16x512xf32>
    %251 = vector.extract_strided_slice %250 {offsets = [0, 0], sizes = [16, 128], strides = [1, 1]} : vector<16x512xf32> to vector<16x128xf32>
    %cst_87 = arith.constant 5.000000e-01 : f32
    %252 = vector.broadcast %cst_87 : f32 to vector<16x128xf32>
    %253 = arith.mulf %252, %251 : vector<16x128xf32>
    %254 = math.tanh %253 : vector<16x128xf32>
    %cst_88 = arith.constant 5.000000e-01 : f32
    %255 = vector.broadcast %cst_88 : f32 to vector<16x128xf32>
    %256 = arith.mulf %255, %254 : vector<16x128xf32>
    %cst_89 = arith.constant 5.000000e-01 : f32
    %257 = vector.broadcast %cst_89 : f32 to vector<16x128xf32>
    %258 = arith.addf %256, %257 : vector<16x128xf32>
    %259 = vector.extract_strided_slice %250 {offsets = [0, 128], sizes = [16, 128], strides = [1, 1]} : vector<16x512xf32> to vector<16x128xf32>
    %cst_90 = arith.constant 5.000000e-01 : f32
    %260 = vector.broadcast %cst_90 : f32 to vector<16x128xf32>
    %261 = arith.mulf %260, %259 : vector<16x128xf32>
    %262 = math.tanh %261 : vector<16x128xf32>
    %cst_91 = arith.constant 5.000000e-01 : f32
    %263 = vector.broadcast %cst_91 : f32 to vector<16x128xf32>
    %264 = arith.mulf %263, %262 : vector<16x128xf32>
    %cst_92 = arith.constant 5.000000e-01 : f32
    %265 = vector.broadcast %cst_92 : f32 to vector<16x128xf32>
    %266 = arith.addf %264, %265 : vector<16x128xf32>
    %267 = vector.extract_strided_slice %250 {offsets = [0, 256], sizes = [16, 128], strides = [1, 1]} : vector<16x512xf32> to vector<16x128xf32>
    %268 = math.tanh %267 : vector<16x128xf32>
    %269 = vector.extract_strided_slice %250 {offsets = [0, 384], sizes = [16, 128], strides = [1, 1]} : vector<16x512xf32> to vector<16x128xf32>
    %cst_93 = arith.constant 5.000000e-01 : f32
    %270 = vector.broadcast %cst_93 : f32 to vector<16x128xf32>
    %271 = arith.mulf %270, %269 : vector<16x128xf32>
    %272 = math.tanh %271 : vector<16x128xf32>
    %cst_94 = arith.constant 5.000000e-01 : f32
    %273 = vector.broadcast %cst_94 : f32 to vector<16x128xf32>
    %274 = arith.mulf %273, %272 : vector<16x128xf32>
    %cst_95 = arith.constant 5.000000e-01 : f32
    %275 = vector.broadcast %cst_95 : f32 to vector<16x128xf32>
    %276 = arith.addf %274, %275 : vector<16x128xf32>
    %277 = arith.mulf %266, %240 : vector<16x128xf32>
    %278 = arith.mulf %258, %268 : vector<16x128xf32>
    %279 = arith.addf %277, %278 : vector<16x128xf32>
    %280 = math.tanh %279 : vector<16x128xf32>
    %281 = arith.mulf %276, %280 : vector<16x128xf32>
    %282 = arith.truncf %281 : vector<16x128xf32> to vector<16x128xbf16>
    %c6 = arith.constant 6 : index
    %c0_96 = arith.constant 0 : index
    %c0_97 = arith.constant 0 : index
    %283 = vector.load %arg7[%c6, %c0_96, %c0_97] : memref<8x16x128xbf16, #tpu.memory_space<vmem>>, vector<1x16x128xbf16>
    %284 = vector.shape_cast %283 : vector<1x16x128xbf16> to vector<16x128xbf16>
    %285 = vector.shape_cast %282 : vector<16x128xbf16> to vector<1x16x128xbf16>
    tpu.vector_store %arg7[%c6, %c0_96, %c0_97], %285 {strides = array<i32>} : memref<8x16x128xbf16, #tpu.memory_space<vmem>>, vector<1x16x128xbf16>,
    %286 = vector.extract_strided_slice %12 {offsets = [112, 0], sizes = [16, 512], strides = [1, 1]} : vector<128x512xf32> to vector<16x512xf32>
    %287 = arith.truncf %281 : vector<16x128xf32> to vector<16x128xbf16>
    %cst_98 = arith.constant dense<0.000000e+00> : vector<16x512xf32>
    %288 = tpu.matmul %287, %5, %cst_98 {dimension_numbers = #tpu.dot_dimension_numbers<[1], [0], [0], [1], [0, 0, 1, 1], [], []>} : vector<16x128xbf16>, vector<128x512xbf16>, vector<16x512xf32> -> vector<16x512xf32>
    %289 = arith.addf %286, %288 : vector<16x512xf32>
    %290 = vector.extract_strided_slice %289 {offsets = [0, 0], sizes = [16, 128], strides = [1, 1]} : vector<16x512xf32> to vector<16x128xf32>
    %cst_99 = arith.constant 5.000000e-01 : f32
    %291 = vector.broadcast %cst_99 : f32 to vector<16x128xf32>
    %292 = arith.mulf %291, %290 : vector<16x128xf32>
    %293 = math.tanh %292 : vector<16x128xf32>
    %cst_100 = arith.constant 5.000000e-01 : f32
    %294 = vector.broadcast %cst_100 : f32 to vector<16x128xf32>
    %295 = arith.mulf %294, %293 : vector<16x128xf32>
    %cst_101 = arith.constant 5.000000e-01 : f32
    %296 = vector.broadcast %cst_101 : f32 to vector<16x128xf32>
    %297 = arith.addf %295, %296 : vector<16x128xf32>
    %298 = vector.extract_strided_slice %289 {offsets = [0, 128], sizes = [16, 128], strides = [1, 1]} : vector<16x512xf32> to vector<16x128xf32>
    %cst_102 = arith.constant 5.000000e-01 : f32
    %299 = vector.broadcast %cst_102 : f32 to vector<16x128xf32>
    %300 = arith.mulf %299, %298 : vector<16x128xf32>
    %301 = math.tanh %300 : vector<16x128xf32>
    %cst_103 = arith.constant 5.000000e-01 : f32
    %302 = vector.broadcast %cst_103 : f32 to vector<16x128xf32>
    %303 = arith.mulf %302, %301 : vector<16x128xf32>
    %cst_104 = arith.constant 5.000000e-01 : f32
    %304 = vector.broadcast %cst_104 : f32 to vector<16x128xf32>
    %305 = arith.addf %303, %304 : vector<16x128xf32>
    %306 = vector.extract_strided_slice %289 {offsets = [0, 256], sizes = [16, 128], strides = [1, 1]} : vector<16x512xf32> to vector<16x128xf32>
    %307 = math.tanh %306 : vector<16x128xf32>
    %308 = vector.extract_strided_slice %289 {offsets = [0, 384], sizes = [16, 128], strides = [1, 1]} : vector<16x512xf32> to vector<16x128xf32>
    %cst_105 = arith.constant 5.000000e-01 : f32
    %309 = vector.broadcast %cst_105 : f32 to vector<16x128xf32>
    %310 = arith.mulf %309, %308 : vector<16x128xf32>
    %311 = math.tanh %310 : vector<16x128xf32>
    %cst_106 = arith.constant 5.000000e-01 : f32
    %312 = vector.broadcast %cst_106 : f32 to vector<16x128xf32>
    %313 = arith.mulf %312, %311 : vector<16x128xf32>
    %cst_107 = arith.constant 5.000000e-01 : f32
    %314 = vector.broadcast %cst_107 : f32 to vector<16x128xf32>
    %315 = arith.addf %313, %314 : vector<16x128xf32>
    %316 = arith.mulf %305, %279 : vector<16x128xf32>
    %317 = arith.mulf %297, %307 : vector<16x128xf32>
    %318 = arith.addf %316, %317 : vector<16x128xf32>
    %319 = math.tanh %318 : vector<16x128xf32>
    %320 = arith.mulf %315, %319 : vector<16x128xf32>
    %321 = arith.truncf %320 : vector<16x128xf32> to vector<16x128xbf16>
    %c7 = arith.constant 7 : index
    %c0_108 = arith.constant 0 : index
    %c0_109 = arith.constant 0 : index
    %322 = vector.load %arg7[%c7, %c0_108, %c0_109] : memref<8x16x128xbf16, #tpu.memory_space<vmem>>, vector<1x16x128xbf16>
    %323 = vector.shape_cast %322 : vector<1x16x128xbf16> to vector<16x128xbf16>
    %324 = vector.shape_cast %321 : vector<16x128xbf16> to vector<1x16x128xbf16>
    tpu.vector_store %arg7[%c7, %c0_108, %c0_109], %324 {strides = array<i32>} : memref<8x16x128xbf16, #tpu.memory_space<vmem>>, vector<1x16x128xbf16>,
    %c0_110 = arith.constant 0 : index
    %c0_111 = arith.constant 0 : index
    %325 = vector.load %arg8[%c0_110, %c0_111] : memref<16x128xf32, #tpu.memory_space<vmem>>, vector<16x128xf32>
    tpu.vector_store %arg8[%c0_110, %c0_111], %320 {strides = array<i32>} : memref<16x128xf32, #tpu.memory_space<vmem>>, vector<16x128xf32>,
    %c0_112 = arith.constant 0 : index
    %c0_113 = arith.constant 0 : index
    %326 = vector.load %arg9[%c0_112, %c0_113] : memref<16x128xf32, #tpu.memory_space<vmem>>, vector<16x128xf32>
    tpu.vector_store %arg9[%c0_112, %c0_113], %318 {strides = array<i32>} : memref<16x128xf32, #tpu.memory_space<vmem>>, vector<16x128xf32>,
    return
  }
  func.func @transform_0(%arg0: i32) -> (i32, i32, i32) {
    %c0_i32 = arith.constant 0 : i32
    %c0_i32_0 = arith.constant 0 : i32
    %c0_i32_1 = arith.constant 0 : i32
    return %arg0, %c0_i32, %c0_i32_0 : i32, i32, i32
  }
  func.func @transform_1(%arg0: i32) -> (i32, i32) {
    %c0_i32 = arith.constant 0 : i32
    %c0_i32_0 = arith.constant 0 : i32
    %c0_i32_1 = arith.constant 0 : i32
    return %c0_i32, %c0_i32_0 : i32, i32
  }
  func.func @transform_2(%arg0: i32) -> (i32, i32) {
    %c0_i32 = arith.constant 0 : i32
    %c0_i32_0 = arith.constant 0 : i32
    %c0_i32_1 = arith.constant 0 : i32
    return %c0_i32, %c0_i32_0 : i32, i32
  }
  func.func @transform_3(%arg0: i32) -> (i32, i32) {
    %c0_i32 = arith.constant 0 : i32
    %c0_i32_0 = arith.constant 0 : i32
    %c0_i32_1 = arith.constant 0 : i32
    return %c0_i32, %c0_i32_0 : i32, i32
  }
  func.func @transform_4(%arg0: i32) -> (i32, i32) {
    %c0_i32 = arith.constant 0 : i32
    %c0_i32_0 = arith.constant 0 : i32
    %c0_i32_1 = arith.constant 0 : i32
    return %c0_i32, %c0_i32_0 : i32, i32
  }
  func.func @transform_5(%arg0: i32) -> (i32, i32) {
    %c0_i32 = arith.constant 0 : i32
    %c0_i32_0 = arith.constant 0 : i32
    %c0_i32_1 = arith.constant 0 : i32
    return %c0_i32, %c0_i32_0 : i32, i32
  }
  func.func @transform_6(%arg0: i32) -> (i32, i32, i32) {
    %c0_i32 = arith.constant 0 : i32
    %c0_i32_0 = arith.constant 0 : i32
    %c0_i32_1 = arith.constant 0 : i32
    return %arg0, %c0_i32, %c0_i32_0 : i32, i32, i32
  }
}

</mosaic_0001>

<bundles_post_ra>
// kernel: tpu_custom_call.1
= control target key start
LH: loop header
LB: loop body
LE: loop exit
PB: predicated region body
PF: predicated region fallthrough
CT: control target
= control target key end

     0   :  { %11 = vsyncpa [#allocation5], 0  ;;  %s3356_s0 = inlined_call_operand.hbm [shape: bf16[8,16,128], index: 0, kind: input, shape index: {}]   ;;  %s3357_s1 = inlined_call_operand.hbm [shape: f32[16,128], index: 1, kind: input, shape index: {}]   ;;  %s3358_s2 = inlined_call_operand.hbm [shape: f32[16,128], index: 2, kind: input, shape index: {}]   ;;  %s3359_s3 = inlined_call_operand.hbm [shape: bf16[128,512], index: 3, kind: input, shape index: {}]   ;;  %s3360_s4 = inlined_call_operand.hbm [shape: bf16[128,512], index: 4, kind: input, shape index: {}]   ;;  %s3361_s5 = inlined_call_operand.vmem [shape: f32[1,512], index: 5, kind: input, shape index: {}]   ;;  %s3362_s6 = inlined_call_operand.hbm [shape: bf16[8,16,128], index: 6, kind: output, shape index: {}]  }
   0x1   :  { %12 = vsyncpa [#allocation8], 0 }
   0x2   :  { %13 = vsyncpa [#allocation11], 0 }
   0x3   :  { %14 = vsyncpa [#allocation6], 0  ;;  %s2537_s21 = smov [#allocation7]  }
   0x4   :  { %s32_s22 = sshll.u32 %s2537_s21, 4  ;;  %s33_s22 = int_to_ptr.vmem [resolvable:$true] %s32_s22 }
   0x5   :  { %s2417_s23 = scalar_lea.vmem %s33_s22, 256  ;;  %p2422_p1 = scmp.lt.s32.totalorder %s33_s22, %s33_s22 }
   0x6   :  { %p2418_p0 = scmp.ne.s32.totalorder %s33_s22, %s2417_s23  ;;  %p2423_p2 = scmp.lt.s32.totalorder %s2417_s23, %s2417_s23 }
   0x8   :  { %p2424_p3 = por %p2423_p2, %p2422_p1 }
   0xa   :  { %p2425_p4 = pnand %p2424_p3, %p2418_p0 }
   0xc   :  { %2428 = shalt.err (!%p2425_p4)
}
   0xd   :  { %s2538_s24 = smov 128   ;;  %s2539_s25 = smov 8  }
   0xe   :  { %38 = dma.hbm_to_vmem [thread:$0]  %s3357_s1, 256, %s33_s22, [#allocation8], %s2538_s24, %s2538_s24, %s2539_s25  }
   0xf   :  { %s2540_s28 = smov [#allocation10]  }
  0x10   :  { %s56_s29 = sshll.u32 %s2540_s28, 4  ;;  %s57_s29 = int_to_ptr.vmem [resolvable:$true] %s56_s29 }
  0x11   :  { %s2437_s30 = scalar_lea.vmem %s57_s29, 4096  ;;  %p2442_p6 = scmp.lt.s32.totalorder %s57_s29, %s57_s29 }
  0x12   :  { %p2438_p5 = scmp.ne.s32.totalorder %s57_s29, %s2437_s30  ;;  %p2443_p7 = scmp.lt.s32.totalorder %s2437_s30, %s2437_s30 }
  0x14   :  { %p2444_p8 = por %p2443_p7, %p2442_p6 }
  0x16   :  { %p2445_p9 = pnand %p2444_p8, %p2438_p5 }
  0x18   :  { %2448 = shalt.err (!%p2445_p9)
}
  0x19   :  { %s2541_s7 = smov 256   ;;  %s2542_s8 = smov 16  }
  0x1a   :  { %62 = dma.hbm_to_vmem [thread:$0]  %s3359_s3, 4096, %s57_s29, [#allocation11], %s2541_s7, %s2541_s7, %s2542_s8  }
  0x1b   :  { %s2543_s1 = smov [#allocation4]  }
  0x1c   :  { %s20_s11 = sshll.u32 %s2543_s1, 4  ;;  %s21_s11 = int_to_ptr.vmem [resolvable:$true] %s20_s11 }
  0x1d   :  { %s2457_s12 = scalar_lea.vmem %s21_s11, 1024  ;;  %p2462_p11 = scmp.lt.s32.totalorder %s21_s11, %s21_s11 }
  0x1e   :  { %p2458_p10 = scmp.ne.s32.totalorder %s21_s11, %s2457_s12  ;;  %p2463_p12 = scmp.lt.s32.totalorder %s2457_s12, %s2457_s12 }
  0x20   :  { %p2464_p13 = por %p2463_p12, %p2462_p11 }
  0x22   :  { %p2465_p0 = pnand %p2464_p13, %p2458_p10 }
  0x24   :  { %2468 = shalt.err (!%p2465_p0)
}
  0x25   :  { %s2544_s13 = smov 64   ;;  %s2545_s14 = smov 4  }
  0x26   :  { %26 = dma.hbm_to_vmem [thread:$0]  %s3356_s0, 1024, %s21_s11, [#allocation5], %s2544_s13, %s2544_s13, %s2545_s14  }
  0x27   :  { %s2546_s3 = smov [#allocation9]   ;;  %s2547_s18 = smov [#allocation12]  }
  0x28   :  { %s44_s17 = sshll.u32 %s2546_s3, 4  ;;  %s68_s19 = sshll.u32 %s2547_s18, 4  ;;  %s45_s17 = int_to_ptr.vmem [resolvable:$true] %s44_s17  ;;  %s69_s19 = int_to_ptr.vmem [resolvable:$true] %s68_s19 }
  0x29   :  { %s2477_s20 = scalar_lea.vmem %s45_s17, 256  ;;  %p2482_p2 = scmp.lt.s32.totalorder %s45_s17, %s45_s17 }
  0x2a   :  { %p2478_p1 = scmp.ne.s32.totalorder %s45_s17, %s2477_s20  ;;  %p2483_p3 = scmp.lt.s32.totalorder %s2477_s20, %s2477_s20 }
  0x2c   :  { %p2484_p4 = por %p2483_p3, %p2482_p2 }
  0x2e   :  { %p2485_p5 = pnand %p2484_p4, %p2478_p1 }
  0x30   :  { %2488 = shalt.err (!%p2485_p5)
}
  0x31   :  { %50 = dma.hbm_to_vmem [thread:$0]  %s3358_s2, 256, %s45_s17, [#allocation8], %s2538_s24, %s2538_s24, %s2539_s25  }
  0x32   :  { %s2497_s0 = scalar_lea.vmem %s69_s19, 4096  ;;  %p2502_p7 = scmp.lt.s32.totalorder %s69_s19, %s69_s19 }
  0x33   :  { %p2498_p6 = scmp.ne.s32.totalorder %s69_s19, %s2497_s0  ;;  %p2503_p8 = scmp.lt.s32.totalorder %s2497_s0, %s2497_s0 }
  0x35   :  { %p2504_p9 = por %p2503_p8, %p2502_p7 }
  0x37   :  { %p2505_p10 = pnand %p2504_p9, %p2498_p6 }
  0x39   :  { %2508 = shalt.err (!%p2505_p10)
}
  0x3a   :  { %74 = dma.hbm_to_vmem [thread:$0]  %s3360_s4, 4096, %s69_s19, [#allocation11], %s2541_s7, %s2541_s7, %s2542_s8  }
  0x3b   :  { %2529 = dma.done.wait [#allocation5], 1024  }
  0x3c   :  { %2530 = vsyncadd [#allocation5], 4294966272 }
  0x3d   :  { %2531 = dma.done.wait [#allocation8], 512  }
  0x3e   :  { %2532 = vsyncadd [#allocation8], 4294966784 }
  0x3f   :  { %2533 = dma.done.wait [#allocation11], 8192  }
  0x40   :  { %2534 = vsyncadd [#allocation11], 4294959104  ;;  %v3363_v0 = vmov 0   ;;  %v2113_v1 = vld [vmem:[#allocation10 + $0xe4] ss:$16 sps:$4 sm:$0xff]   ;;  %v2165_v43 = vld [vmem:[#allocation4 + $0x8] sm:$0xff]  }
  0x41   :  { %451 = vmatprep.mubr.bf16.mxu0 %v3363_v0  ;;  %564 = vmatprep.mubr.bf16.mxu1 %v3363_v0  ;;  %v2115_v2 = vld [vmem:[#allocation10 + $0xec] ss:$16 sps:$4 sm:$0xff]   ;;  %v2117_v3 = vld [vmem:[#allocation10 + $0xe0] ss:$16 sps:$4 sm:$0xff]   ;;  %v2118_v4 = vld [vmem:[#allocation10 + $0xe8] ss:$16 sps:$4 sm:$0xff]  }
  0x42   :  { %419 = vmatprep.subr.bf16.mxu0 %v2113_v1  ;;  %532 = vmatprep.subr.bf16.mxu1 %v2115_v2  ;;  %v2119_v5 = vld [vmem:[#allocation10 + $0xc4] ss:$16 sps:$4 sm:$0xff]   ;;  %v2121_v6 = vld [vmem:[#allocation10 + $0xcc] ss:$16 sps:$4 sm:$0xff]   ;;  %v2123_v7 = vld [vmem:[#allocation10 + $0xc0] ss:$16 sps:$4 sm:$0xff]  }
  0x43   :  { %420 = vmatpush1.bf16.msra.mxu0 %v2117_v3  ;;  %533 = vmatpush1.bf16.msra.mxu1 %v2118_v4  ;;  %v2124_v8 = vld [vmem:[#allocation10 + $0xc8] ss:$16 sps:$4 sm:$0xff]   ;;  %v2125_v9 = vld [vmem:[#allocation10 + $0xa4] ss:$16 sps:$4 sm:$0xff]   ;;  %v2127_v10 = vld [vmem:[#allocation10 + $0xac] ss:$16 sps:$4 sm:$0xff]  }
  0x44   :  { %421 = vmatprep.subr.bf16.mxu0 %v2119_v5  ;;  %534 = vmatprep.subr.bf16.mxu1 %v2121_v6  ;;  %v2129_v11 = vld [vmem:[#allocation10 + $0xa0] ss:$16 sps:$4 sm:$0xff]   ;;  %v2130_v12 = vld [vmem:[#allocation10 + $0xa8] ss:$16 sps:$4 sm:$0xff]   ;;  %v2131_v13 = vld [vmem:[#allocation10 + $0x84] ss:$16 sps:$4 sm:$0xff]  }
  0x45   :  { %v2133_v14 = vld [vmem:[#allocation10 + $0x8c] ss:$16 sps:$4 sm:$0xff]   ;;  %v2135_v15 = vld [vmem:[#allocation10 + $0x80] ss:$16 sps:$4 sm:$0xff]   ;;  %v2136_v16 = vld [vmem:[#allocation10 + $0x88] ss:$16 sps:$4 sm:$0xff]  }
  0x46   :  { %v2137_v17 = vld [vmem:[#allocation10 + $0x64] ss:$16 sps:$4 sm:$0xff]   ;;  %v2139_v18 = vld [vmem:[#allocation10 + $0x6c] ss:$16 sps:$4 sm:$0xff]   ;;  %v2141_v19 = vld [vmem:[#allocation10 + $0x60] ss:$16 sps:$4 sm:$0xff]  }
  0x47   :  { %422 = vmatpush1.bf16.msra.mxu0 %v2123_v7  ;;  %535 = vmatpush1.bf16.msra.mxu1 %v2124_v8  ;;  %v2142_v20 = vld [vmem:[#allocation10 + $0x68] ss:$16 sps:$4 sm:$0xff]   ;;  %v2143_v21 = vld [vmem:[#allocation10 + $0x44] ss:$16 sps:$4 sm:$0xff]   ;;  %v2145_v22 = vld [vmem:[#allocation10 + $0x4c] ss:$16 sps:$4 sm:$0xff]  }
  0x48   :  { %423 = vmatprep.subr.bf16.mxu0 %v2125_v9  ;;  %536 = vmatprep.subr.bf16.mxu1 %v2127_v10  ;;  %v2147_v23 = vld [vmem:[#allocation10 + $0x40] ss:$16 sps:$4 sm:$0xff]   ;;  %v2148_v24 = vld [vmem:[#allocation10 + $0x48] ss:$16 sps:$4 sm:$0xff]   ;;  %v2149_v25 = vld [vmem:[#allocation10 + $0x24] ss:$16 sps:$4 sm:$0xff]  }
  0x49   :  { %v2151_v26 = vld [vmem:[#allocation10 + $0x2c] ss:$16 sps:$4 sm:$0xff]   ;;  %v2153_v27 = vld [vmem:[#allocation10 + $0x20] ss:$16 sps:$4 sm:$0xff]   ;;  %v2154_v28 = vld [vmem:[#allocation10 + $0x28] ss:$16 sps:$4 sm:$0xff]  }
  0x4a   :  { %v2155_v29 = vld [vmem:[#allocation10 + $0x4] ss:$16 sps:$4 sm:$0xff]   ;;  %v2157_v30 = vld [vmem:[#allocation10 + $0xc] ss:$16 sps:$4 sm:$0xff]   ;;  %v2159_v31 = vld [vmem:[#allocation10] ss:$16 sps:$4 sm:$0xff]  }
  0x4b   :  { %424 = vmatpush1.bf16.msra.mxu0 %v2129_v11  ;;  %537 = vmatpush1.bf16.msra.mxu1 %v2130_v12  ;;  %v2160_v32 = vld [vmem:[#allocation10 + $0x8] ss:$16 sps:$4 sm:$0xff]   ;;  %v2617_v33 = vld [vmem:[#allocation12 + $0xe4] ss:$16 sps:$4 sm:$0xff]   ;;  %v2619_v34 = vld [vmem:[#allocation12 + $0xec] ss:$16 sps:$4 sm:$0xff]  }
  0x4c   :  { %425 = vmatprep.subr.bf16.mxu0 %v2131_v13  ;;  %538 = vmatprep.subr.bf16.mxu1 %v2133_v14  ;;  %v2161_v35 = vld [vmem:[#allocation4] sm:$0xff]   ;;  %v2627_v38 = vld [vmem:[#allocation12 + $0xe8] ss:$16 sps:$4 sm:$0xff]   ;;  %v2629_v39 = vld [vmem:[#allocation12 + $0xcc] ss:$16 sps:$4 sm:$0xff]   ;;  %v191_v13 = vlaneseq }
  0x4d   :  { %v2621_v36 = vld [vmem:[#allocation12 + $0xe0] ss:$16 sps:$4 sm:$0xff]   ;;  %v2624_v37 = vld [vmem:[#allocation12 + $0xc4] ss:$16 sps:$4 sm:$0xff]   ;;  %v2640_v42 = vld [vmem:[#allocation12 + $0xc8] ss:$16 sps:$4 sm:$0xff]  }
  0x4e   :  { %v2633_v40 = vld [vmem:[#allocation12 + $0xc0] ss:$16 sps:$4 sm:$0xff]   ;;  %v2637_v41 = vld [vmem:[#allocation12 + $0xa4] ss:$16 sps:$4 sm:$0xff]   ;;  %v2649_v46 = vld [vmem:[#allocation12 + $0xac] ss:$16 sps:$4 sm:$0xff]  }
  0x4f   :  { %426 = vmatpush1.bf16.msra.mxu0 %v2135_v15  ;;  %539 = vmatpush1.bf16.msra.mxu1 %v2136_v16  ;;  %v2645_v44 = vld [vmem:[#allocation12 + $0xa0] ss:$16 sps:$4 sm:$0xff]   ;;  %v2647_v45 = vld [vmem:[#allocation12 + $0x84] ss:$16 sps:$4 sm:$0xff]   ;;  %v2652_v47 = vld [vmem:[#allocation12 + $0xa8] ss:$16 sps:$4 sm:$0xff]  }
  0x50   :  { %427 = vmatprep.subr.bf16.mxu0 %v2137_v17  ;;  %540 = vmatprep.subr.bf16.mxu1 %v2139_v18  ;;  %v2654_v48 = vld [vmem:[#allocation12 + $0x8c] ss:$16 sps:$4 sm:$0xff]   ;;  %v2660_v49 = vld [vmem:[#allocation12 + $0x80] ss:$16 sps:$4 sm:$0xff]   ;;  %v2662_v50 = vld [vmem:[#allocation12 + $0x64] ss:$16 sps:$4 sm:$0xff]  }
  0x51   :  { %v2666_v51 = vld [vmem:[#allocation12 + $0x88] ss:$16 sps:$4 sm:$0xff]   ;;  %v2172_v52 = vld [vmem:[#allocation4 + $0x10] sm:$0xff]   ;;  %v2672_v54 = vld [vmem:[#allocation12 + $0x6c] ss:$16 sps:$4 sm:$0xff]   ;;  %v192_v14 = vshrl.u32 %v191_v13, 7 }
  0x52   :  { %v2669_v53 = vld [vmem:[#allocation12 + $0x60] ss:$16 sps:$4 sm:$0xff]   ;;  %v2676_v55 = vld [vmem:[#allocation12 + $0x44] ss:$16 sps:$4 sm:$0xff]   ;;  %v2678_v56 = vld [vmem:[#allocation12 + $0x68] ss:$16 sps:$4 sm:$0xff]  }
  0x53   :  { %428 = vmatpush1.bf16.msra.mxu0 %v2141_v19  ;;  %541 = vmatpush1.bf16.msra.mxu1 %v2142_v20  ;;  %v2680_v57 = vld [vmem:[#allocation12 + $0x4c] ss:$16 sps:$4 sm:$0xff]   ;;  %v2686_v58 = vld [vmem:[#allocation12 + $0x40] ss:$16 sps:$4 sm:$0xff]   ;;  %v2690_v59 = vld [vmem:[#allocation12 + $0x24] ss:$16 sps:$4 sm:$0xff]  }
  0x54   :  { %429 = vmatprep.subr.bf16.mxu0 %v2143_v21  ;;  %542 = vmatprep.subr.bf16.mxu1 %v2145_v22  ;;  %v2692_v60 = vld [vmem:[#allocation12 + $0x48] ss:$16 sps:$4 sm:$0xff]   ;;  %v2696_v62 = vld [vmem:[#allocation12 + $0x20] ss:$16 sps:$4 sm:$0xff]   ;;  %v2698_v63 = vld [vmem:[#allocation12 + $0x2c] ss:$16 sps:$4 sm:$0xff]  }
  0x55   :  { %v2179_v61 = vld [vmem:[#allocation4 + $0x18] sm:$0xff]   ;;  %v2702_v1 = vld [vmem:[#allocation12 + $0x4] ss:$16 sps:$4 sm:$0xff]   ;;  %v2712_v4 = vld [vmem:[#allocation12] ss:$16 sps:$4 sm:$0xff]   ;;  %v193_v19 = vsub.s32 0, %v192_v14 }
  0x56   :  { %v2704_v2 = vld [vmem:[#allocation12 + $0x28] ss:$16 sps:$4 sm:$0xff]   ;;  %v2706_v3 = vld [vmem:[#allocation12 + $0xc] ss:$16 sps:$4 sm:$0xff]   ;;  %v2186_v6 = vld [vmem:[#allocation4 + $0x20] sm:$0xff]   ;;  %v201_v20 = vsub.s32 2, %v192_v14 }
  0x57   :  { %430 = vmatpush1.bf16.msra.mxu0 %v2147_v23  ;;  %543 = vmatpush1.bf16.msra.mxu1 %v2148_v24  ;;  %v2716_v5 = vld [vmem:[#allocation12 + $0x8] ss:$16 sps:$4 sm:$0xff]   ;;  %v2200_v8 = vld [vmem:[#allocation4 + $0x30] sm:$0xff]   ;;  %v97_v10 = vld [vmem:[#allocation7] sm:$0xff]  ;;  %v197_v24 = vsub.s32 1, %v192_v14 }
  0x58   :  { %431 = vmatprep.subr.bf16.mxu0 %v2149_v25  ;;  %544 = vmatprep.subr.bf16.mxu1 %v2151_v26  ;;  %v2193_v7 = vld [vmem:[#allocation4 + $0x28] sm:$0xff]   ;;  %v2207_v9 = vld [vmem:[#allocation4 + $0x38] sm:$0xff]   ;;  %v189_v21 = vld [vmem:[%s3361_s5] sm:$0xf]  ;;  %v205_v25 = vsub.s32 3, %v192_v14  ;;  %s2549_s5 = smov [#allocation13]  }
  0x59   :  { %v98_v11 = vld [vmem:[#allocation7 + $0x8] sm:$0xff]  ;;  %s1942_s24 = sshll.u32 %s2549_s5, 4  ;;  %s1943_s24 = int_to_ptr.vmem [resolvable:$true] %s1942_s24 }
  0x5a   :  { %v645_v12 = vpack.c.bf16 %v98_v11, %v97_v10  ;;  %s2509_s25 = scalar_lea.vmem %s1943_s24, 1024  ;;  %p2514_p12 = scmp.lt.s32.totalorder %s1943_s24, %s1943_s24 }
  0x5b   :  { %432 = vmatpush1.bf16.msra.mxu0 %v2153_v27  ;;  %545 = vmatpush1.bf16.msra.mxu1 %v2154_v28  ;;  %v2784_v28 = vrot.slane %v189_v21, %v193_v19  ;;  %p2510_p11 = scmp.ne.s32.totalorder %s1943_s24, %s2509_s25  ;;  %p2515_p13 = scmp.lt.s32.totalorder %s2509_s25, %s2509_s25 }
  0x5c   :  { %433 = vmatprep.subr.bf16.mxu0 %v2155_v29  ;;  %546 = vmatprep.subr.bf16.mxu1 %v2157_v30  ;;  %v2786_v29 = vrot.slane %v189_v21, %v201_v20 }
  0x5d   :  { %p2516_p0 = por %p2515_p13, %p2514_p12 }
  0x5f   :  { %434 = vmatpush1.bf16.msra.mxu0 %v2159_v31  ;;  %547 = vmatpush1.bf16.msra.mxu1 %v2160_v32  ;;  %v2788_v32 = vrot.slane %v189_v21, %v197_v24  ;;  %p2517_p1 = pnand %p2516_p0, %p2510_p11 }
  0x60   :  { %806 = vmatprep.subr.bf16.mxu0 %v2617_v33  ;;  %849 = vmatprep.subr.bf16.mxu1 %v2619_v34 }
  0x62   :  { %452 = vmatmul.mubr.bf16.vlgmr.msra.gmra.mxu0 %v2161_v35  ;;  %565 = vmatmul.mubr.bf16.vlgmr.msra.gmra.mxu1 %v2161_v35  ;;  %v2790_v35 = vrot.slane %v189_v21, %v205_v25 }
  0x63   :  { %807 = vmatpush1.bf16.msra.mxu0 %v2621_v36  ;;  %461 = vmatprep.mubr.bf16.mxu0 %v3363_v0 }
  0x64   :  { %574 = vmatprep.mubr.bf16.mxu1 %v3363_v0  ;;  %808 = vmatprep.subr.bf16.mxu0 %v2624_v37 }
  0x65   :  { %850 = vmatpush1.bf16.msra.mxu1 %v2627_v38 }
  0x66   :  { %851 = vmatprep.subr.bf16.mxu1 %v2629_v39 }
  0x67   :  { %809 = vmatpush1.bf16.msra.mxu0 %v2633_v40 }
  0x68   :  { %810 = vmatprep.subr.bf16.mxu0 %v2637_v41 }
  0x69   :  { %852 = vmatpush1.bf16.msra.mxu1 %v2640_v42 }
  0x6a   :  { %462 = vmatmul.mubr.bf16.gmra.mxu0 %v2165_v43  ;;  %575 = vmatmul.mubr.bf16.gmra.mxu1 %v2165_v43 }
  0x6b   :  { %471 = vmatprep.mubr.bf16.mxu0 %v3363_v0  ;;  %584 = vmatprep.mubr.bf16.mxu1 %v3363_v0 }
  0x6c   :  { %811 = vmatpush1.bf16.msra.mxu0 %v2645_v44  ;;  %853 = vmatprep.subr.bf16.mxu1 %v2649_v46 }
  0x6d   :  { %812 = vmatprep.subr.bf16.mxu0 %v2647_v45  ;;  %854 = vmatpush1.bf16.msra.mxu1 %v2652_v47 }
  0x6e   :  { %855 = vmatprep.subr.bf16.mxu1 %v2654_v48 }
  0x70   :  { %813 = vmatpush1.bf16.msra.mxu0 %v2660_v49 }
  0x71   :  { %814 = vmatprep.subr.bf16.mxu0 %v2662_v50  ;;  %856 = vmatpush1.bf16.msra.mxu1 %v2666_v51 }
  0x72   :  { %472 = vmatmul.mubr.bf16.gmra.mxu0 %v2172_v52  ;;  %585 = vmatmul.mubr.bf16.gmra.mxu1 %v2172_v52 }
  0x73   :  { %481 = vmatprep.mubr.bf16.mxu0 %v3363_v0  ;;  %594 = vmatprep.mubr.bf16.mxu1 %v3363_v0 }
  0x74   :  { %815 = vmatpush1.bf16.msra.mxu0 %v2669_v53  ;;  %857 = vmatprep.subr.bf16.mxu1 %v2672_v54 }
  0x75   :  { %816 = vmatprep.subr.bf16.mxu0 %v2676_v55  ;;  %858 = vmatpush1.bf16.msra.mxu1 %v2678_v56 }
  0x76   :  { %859 = vmatprep.subr.bf16.mxu1 %v2680_v57 }
  0x78   :  { %817 = vmatpush1.bf16.msra.mxu0 %v2686_v58 }
  0x79   :  { %818 = vmatprep.subr.bf16.mxu0 %v2690_v59  ;;  %860 = vmatpush1.bf16.msra.mxu1 %v2692_v60 }
  0x7a   :  { %482 = vmatmul.mubr.bf16.gmra.mxu0 %v2179_v61  ;;  %595 = vmatmul.mubr.bf16.gmra.mxu1 %v2179_v61 }
  0x7b   :  { %491 = vmatprep.mubr.bf16.mxu0 %v3363_v0  ;;  %604 = vmatprep.mubr.bf16.mxu1 %v3363_v0 }
  0x7c   :  { %819 = vmatpush1.bf16.msra.mxu0 %v2696_v62  ;;  %861 = vmatprep.subr.bf16.mxu1 %v2698_v63 }
  0x7d   :  { %820 = vmatprep.subr.bf16.mxu0 %v2702_v1  ;;  %862 = vmatpush1.bf16.msra.mxu1 %v2704_v2 }
  0x7e   :  { %863 = vmatprep.subr.bf16.mxu1 %v2706_v3 }
  0x80   :  { %821 = vmatpush1.bf16.msra.mxu0 %v2712_v4 }
  0x81   :  { %864 = vmatpush1.bf16.msra.mxu1 %v2716_v5  ;;  %946 = vmatprep.subr.bf16.mxu0 %v2617_v33 }
  0x82   :  { %492 = vmatmul.mubr.bf16.gmra.mxu0 %v2186_v6  ;;  %605 = vmatmul.mubr.bf16.gmra.mxu1 %v2186_v6 }
  0x83   :  { %501 = vmatprep.mubr.bf16.mxu0 %v3363_v0  ;;  %614 = vmatprep.mubr.bf16.mxu1 %v3363_v0 }
  0x84   :  { %989 = vmatprep.subr.bf16.mxu1 %v2619_v34 }
  0x8a   :  { %502 = vmatmul.mubr.bf16.gmra.mxu0 %v2193_v7  ;;  %615 = vmatmul.mubr.bf16.gmra.mxu1 %v2193_v7 }
  0x8b   :  { %511 = vmatprep.mubr.bf16.mxu0 %v3363_v0  ;;  %624 = vmatprep.mubr.bf16.mxu1 %v3363_v0 }
  0x92   :  { %512 = vmatmul.mubr.bf16.gmra.mxu0 %v2200_v8  ;;  %625 = vmatmul.mubr.bf16.gmra.mxu1 %v2200_v8 }
  0x93   :  { %521 = vmatprep.mubr.bf16.mxu0 %v3363_v0  ;;  %634 = vmatprep.mubr.bf16.mxu1 %v3363_v0 }
  0x9a   :  { %522 = vmatmul.mubr.bf16.gmra.mxu0 %v2207_v9  ;;  %635 = vmatmul.mubr.bf16.gmra.mxu1 %v2207_v9 }
  0x9b   :  { %838 = vmatprep.mubr.bf16.mxu0 %v3363_v0  ;;  %881 = vmatprep.mubr.bf16.mxu1 %v3363_v0 }
  0xa2   :  { %839 = vmatmul.mubr.bf16.vlgmr.msra.gmra.mxu0 %v645_v12  ;;  %882 = vmatmul.mubr.bf16.vlgmr.msra.gmra.mxu1 %v645_v12 }
  0xa3   :  { %947 = vmatpush1.bf16.msra.mxu0 %v2621_v36  ;;  %990 = vmatpush1.bf16.msra.mxu1 %v2627_v38 }
  0xa4   :  { %948 = vmatprep.subr.bf16.mxu0 %v2624_v37  ;;  %991 = vmatprep.subr.bf16.mxu1 %v2629_v39 }
  0xa5   :  { %978 = vmatprep.mubr.bf16.mxu0 %v3363_v0  ;;  %1021 = vmatprep.mubr.bf16.mxu1 %v3363_v0 }
  0xa7   :  { %949 = vmatpush1.bf16.msra.mxu0 %v2633_v40  ;;  %992 = vmatpush1.bf16.msra.mxu1 %v2640_v42 }
  0xa8   :  { %950 = vmatprep.subr.bf16.mxu0 %v2637_v41  ;;  %993 = vmatprep.subr.bf16.mxu1 %v2649_v46 }
  0xab   :  { %951 = vmatpush1.bf16.msra.mxu0 %v2645_v44  ;;  %994 = vmatpush1.bf16.msra.mxu1 %v2652_v47 }
  0xac   :  { %952 = vmatprep.subr.bf16.mxu0 %v2647_v45  ;;  %995 = vmatprep.subr.bf16.mxu1 %v2654_v48 }
  0xaf   :  { %953 = vmatpush1.bf16.msra.mxu0 %v2660_v49  ;;  %996 = vmatpush1.bf16.msra.mxu1 %v2666_v51 }
  0xb0   :  { %954 = vmatprep.subr.bf16.mxu0 %v2662_v50  ;;  %997 = vmatprep.subr.bf16.mxu1 %v2672_v54 }
  0xb3   :  { %955 = vmatpush1.bf16.msra.mxu0 %v2669_v53  ;;  %998 = vmatpush1.bf16.msra.mxu1 %v2678_v56 }
  0xb4   :  { %956 = vmatprep.subr.bf16.mxu0 %v2676_v55  ;;  %999 = vmatprep.subr.bf16.mxu1 %v2680_v57 }
  0xb7   :  { %957 = vmatpush1.bf16.msra.mxu0 %v2686_v58  ;;  %1000 = vmatpush1.bf16.msra.mxu1 %v2692_v60 }
  0xb8   :  { %958 = vmatprep.subr.bf16.mxu0 %v2690_v59  ;;  %1001 = vmatprep.subr.bf16.mxu1 %v2698_v63 }
  0xbb   :  { %959 = vmatpush1.bf16.msra.mxu0 %v2696_v62  ;;  %1002 = vmatpush1.bf16.msra.mxu1 %v2704_v2 }
  0xbc   :  { %960 = vmatprep.subr.bf16.mxu0 %v2702_v1  ;;  %1003 = vmatprep.subr.bf16.mxu1 %v2706_v3 }
  0xbf   :  { %961 = vmatpush1.bf16.msra.mxu0 %v2712_v4  ;;  %1004 = vmatpush1.bf16.msra.mxu1 %v2716_v5 }
  0xc0   :  { %1087 = vmatprep.subr.bf16.mxu0 %v2617_v33  ;;  %1130 = vmatprep.subr.bf16.mxu1 %v2619_v34 }
 0x122   :  { %v2765_v15 = vpop.f32.mrf.mxu0  ;;  %v2767_v16 = vpop.f32.mrf.mxu1 }
 0x124   :  { %v2769_v17 = vpop.f32.mrf.mxu0  ;;  %v2771_v18 = vpop.f32.mrf.mxu1 }
 0x126   :  { %v2776_v22 = vpop.f32.mrf.mxu0  ;;  %v2778_v23 = vpop.f32.mrf.mxu1 }
 0x128   :  { %v2780_v26 = vpop.f32.mrf.mxu0  ;;  %v2782_v27 = vpop.f32.mrf.mxu1 }
 0x12a   :  { %v463_v30 = vpop.f32.mrf.mxu0  ;;  %v576_v31 = vpop.f32.mrf.mxu1 }
 0x12b   :  { %v2793_v43 = vadd.f32 %v463_v30, %v2784_v28  ;;  %v2796_v52 = vadd.f32 %v576_v31, %v2786_v29 }
 0x12c   :  { %v465_v61 = vpop.f32.mrf.mxu0  ;;  %v578_v6 = vpop.f32.mrf.mxu1 }
 0x12d   :  { %v2799_v7 = vadd.f32 %v465_v61, %v2788_v32  ;;  %v2802_v8 = vadd.f32 %v578_v6, %v2790_v35 }
 0x12e   :  { %v467_v9 = vpop.f32.mrf.mxu0  ;;  %v580_v10 = vpop.f32.mrf.mxu1 }
 0x12f   :  { %3365 = vst [vmem:[#allocation18_spill] sm:$0xff] %v2802_v8  ;;  %v2805_v11 = vadd.f32 %v467_v9, %v2784_v28  ;;  %v2808_v12 = vadd.f32 %v580_v10, %v2786_v29 }
 0x130   :  { %v469_v13 = vpop.f32.mrf.mxu0  ;;  %v582_v14 = vpop.f32.mrf.mxu1 }
 0x131   :  { %3366 = vst [vmem:[#allocation19_spill] sm:$0xff] %v2808_v12  ;;  %v2811_v19 = vadd.f32 %v469_v13, %v2788_v32  ;;  %v2814_v20 = vadd.f32 %v582_v14, %v2790_v35 }
 0x132   :  { %v473_v21 = vpop.f32.mrf.mxu0  ;;  %v586_v24 = vpop.f32.mrf.mxu1 }
 0x133   :  { %3367 = vst [vmem:[#allocation20_spill] sm:$0xff] %v2814_v20  ;;  %v2817_v25 = vadd.f32 %v473_v21, %v2784_v28  ;;  %v2820_v30 = vadd.f32 %v586_v24, %v2786_v29 }
 0x134   :  { %v475_v31 = vpop.f32.mrf.mxu0  ;;  %v588_v61 = vpop.f32.mrf.mxu1 }
 0x135   :  { %3368 = vst [vmem:[#allocation21_spill] sm:$0xff] %v2817_v25  ;;  %3369 = vst [vmem:[#allocation22_spill] sm:$0xff] %v2820_v30  ;;  %v2823_v6 = vadd.f32 %v475_v31, %v2788_v32  ;;  %v2826_v9 = vadd.f32 %v588_v61, %v2790_v35 }
 0x136   :  { %v477_v10 = vpop.f32.mrf.mxu0  ;;  %v590_v13 = vpop.f32.mrf.mxu1 }
 0x137   :  { %3370 = vst [vmem:[#allocation23_spill] sm:$0xff] %v2823_v6  ;;  %3371 = vst [vmem:[#allocation24_spill] sm:$0xff] %v2826_v9  ;;  %v2829_v14 = vadd.f32 %v477_v10, %v2784_v28  ;;  %v2832_v0 = vadd.f32 %v590_v13, %v2786_v29 }
 0x138   :  { %v479_v21 = vpop.f32.mrf.mxu0  ;;  %v592_v25 = vpop.f32.mrf.mxu1 }
 0x139   :  { %3372 = vst [vmem:[#allocation25_spill] sm:$0xff] %v2829_v14  ;;  %3373 = vst [vmem:[#allocation26_spill] sm:$0xff] %v2832_v0  ;;  %v2835_v24 = vadd.f32 %v479_v21, %v2788_v32  ;;  %v2838_v30 = vadd.f32 %v592_v25, %v2790_v35 }
 0x13a   :  { %v483_v31 = vpop.f32.mrf.mxu0  ;;  %v596_v6 = vpop.f32.mrf.mxu1 }
 0x13b   :  { %3374 = vst [vmem:[#allocation27_spill] sm:$0xff] %v2835_v24  ;;  %3375 = vst [vmem:[#allocation28_spill] sm:$0xff] %v2838_v30  ;;  %v2841_v61 = vadd.f32 %v483_v31, %v2784_v28  ;;  %v2844_v9 = vadd.f32 %v596_v6, %v2786_v29 }
 0x13c   :  { %v485_v10 = vpop.f32.mrf.mxu0  ;;  %v598_v14 = vpop.f32.mrf.mxu1 }
 0x13d   :  { %3376 = vst [vmem:[#allocation29_spill] sm:$0xff] %v2841_v61  ;;  %3377 = vst [vmem:[#allocation30_spill] sm:$0xff] %v2844_v9  ;;  %v2847_v13 = vadd.f32 %v485_v10, %v2788_v32  ;;  %v2850_v0 = vadd.f32 %v598_v14, %v2790_v35 }
 0x13e   :  { %v487_v21 = vpop.f32.mrf.mxu0  ;;  %v600_v24 = vpop.f32.mrf.mxu1 }
 0x13f   :  { %3378 = vst [vmem:[#allocation31_spill] sm:$0xff] %v2847_v13  ;;  %3379 = vst [vmem:[#allocation32_spill] sm:$0xff] %v2850_v0  ;;  %v2853_v25 = vadd.f32 %v487_v21, %v2784_v28  ;;  %v2856_v30 = vadd.f32 %v600_v24, %v2786_v29 }
 0x140   :  { %v489_v31 = vpop.f32.mrf.mxu0  ;;  %v602_v61 = vpop.f32.mrf.mxu1 }
 0x141   :  { %3380 = vst [vmem:[#allocation33_spill] sm:$0xff] %v2853_v25  ;;  %3381 = vst [vmem:[#allocation34_spill] sm:$0xff] %v2856_v30  ;;  %v2859_v6 = vadd.f32 %v489_v31, %v2788_v32  ;;  %v2862_v9 = vadd.f32 %v602_v61, %v2790_v35 }
 0x142   :  { %v493_v10 = vpop.f32.mrf.mxu0  ;;  %v606_v13 = vpop.f32.mrf.mxu1 }
 0x143   :  { %3382 = vst [vmem:[#allocation35_spill] sm:$0xff] %v2859_v6  ;;  %3383 = vst [vmem:[#allocation36_spill] sm:$0xff] %v2862_v9  ;;  %v2865_v14 = vadd.f32 %v493_v10, %v2784_v28  ;;  %v2868_v0 = vadd.f32 %v606_v13, %v2786_v29 }
 0x144   :  { %v495_v21 = vpop.f32.mrf.mxu0  ;;  %v608_v25 = vpop.f32.mrf.mxu1 }
 0x145   :  { %3384 = vst [vmem:[#allocation37_spill] sm:$0xff] %v2865_v14  ;;  %3385 = vst [vmem:[#allocation38_spill] sm:$0xff] %v2868_v0  ;;  %v2871_v24 = vadd.f32 %v495_v21, %v2788_v32  ;;  %v2874_v30 = vadd.f32 %v608_v25, %v2790_v35 }
 0x146   :  { %v497_v31 = vpop.f32.mrf.mxu0  ;;  %v610_v6 = vpop.f32.mrf.mxu1 }
 0x147   :  { %3386 = vst [vmem:[#allocation39_spill] sm:$0xff] %v2871_v24  ;;  %3387 = vst [vmem:[#allocation40_spill] sm:$0xff] %v2874_v30  ;;  %v2877_v61 = vadd.f32 %v497_v31, %v2784_v28  ;;  %v2880_v9 = vadd.f32 %v610_v6, %v2786_v29 }
 0x148   :  { %v499_v10 = vpop.f32.mrf.mxu0  ;;  %v612_v14 = vpop.f32.mrf.mxu1 }
 0x149   :  { %3388 = vst [vmem:[#allocation41_spill] sm:$0xff] %v2877_v61  ;;  %3389 = vst [vmem:[#allocation42_spill] sm:$0xff] %v2880_v9  ;;  %v2883_v13 = vadd.f32 %v499_v10, %v2788_v32  ;;  %v2886_v0 = vadd.f32 %v612_v14, %v2790_v35 }
 0x14a   :  { %v503_v21 = vpop.f32.mrf.mxu0  ;;  %v616_v24 = vpop.f32.mrf.mxu1 }
 0x14b   :  { %3390 = vst [vmem:[#allocation43_spill] sm:$0xff] %v2883_v13  ;;  %3391 = vst [vmem:[#allocation44_spill] sm:$0xff] %v2886_v0  ;;  %v2889_v25 = vadd.f32 %v503_v21, %v2784_v28  ;;  %v2892_v30 = vadd.f32 %v616_v24, %v2786_v29 }
 0x14c   :  { %v505_v31 = vpop.f32.mrf.mxu0  ;;  %v618_v61 = vpop.f32.mrf.mxu1 }
 0x14d   :  { %3392 = vst [vmem:[#allocation45_spill] sm:$0xff] %v2889_v25  ;;  %3393 = vst [vmem:[#allocation46_spill] sm:$0xff] %v2892_v30  ;;  %v2895_v6 = vadd.f32 %v505_v31, %v2788_v32  ;;  %v2898_v9 = vadd.f32 %v618_v61, %v2790_v35 }
 0x14e   :  { %v507_v10 = vpop.f32.mrf.mxu0  ;;  %v620_v13 = vpop.f32.mrf.mxu1 }
 0x14f   :  { %3394 = vst [vmem:[#allocation47_spill] sm:$0xff] %v2895_v6  ;;  %3395 = vst [vmem:[#allocation48_spill] sm:$0xff] %v2898_v9  ;;  %v2901_v14 = vadd.f32 %v507_v10, %v2784_v28  ;;  %v2904_v0 = vadd.f32 %v620_v13, %v2786_v29 }
 0x150   :  { %v509_v21 = vpop.f32.mrf.mxu0  ;;  %v622_v25 = vpop.f32.mrf.mxu1 }
 0x151   :  { %3396 = vst [vmem:[#allocation49_spill] sm:$0xff] %v2901_v14  ;;  %3397 = vst [vmem:[#allocation50_spill] sm:$0xff] %v2904_v0  ;;  %v2907_v24 = vadd.f32 %v509_v21, %v2788_v32  ;;  %v2910_v30 = vadd.f32 %v622_v25, %v2790_v35 }
 0x152   :  { %v513_v31 = vpop.f32.mrf.mxu0  ;;  %v626_v6 = vpop.f32.mrf.mxu1 }
 0x153   :  { %3398 = vst [vmem:[#allocation51_spill] sm:$0xff] %v2907_v24  ;;  %3399 = vst [vmem:[#allocation52_spill] sm:$0xff] %v2910_v30  ;;  %v2913_v61 = vadd.f32 %v513_v31, %v2784_v28  ;;  %v2916_v9 = vadd.f32 %v626_v6, %v2786_v29 }
 0x154   :  { %v515_v10 = vpop.f32.mrf.mxu0  ;;  %v628_v14 = vpop.f32.mrf.mxu1 }
 0x155   :  { %3400 = vst [vmem:[#allocation53_spill] sm:$0xff] %v2913_v61  ;;  %3401 = vst [vmem:[#allocation54_spill] sm:$0xff] %v2916_v9  ;;  %v2919_v13 = vadd.f32 %v515_v10, %v2788_v32  ;;  %v2922_v0 = vadd.f32 %v628_v14, %v2790_v35 }
 0x156   :  { %v517_v21 = vpop.f32.mrf.mxu0  ;;  %v630_v24 = vpop.f32.mrf.mxu1 }
 0x157   :  { %3402 = vst [vmem:[#allocation55_spill] sm:$0xff] %v2919_v13  ;;  %3403 = vst [vmem:[#allocation56_spill] sm:$0xff] %v2922_v0  ;;  %v2925_v25 = vadd.f32 %v517_v21, %v2784_v28  ;;  %v2928_v30 = vadd.f32 %v630_v24, %v2786_v29 }
 0x158   :  { %v519_v31 = vpop.f32.mrf.mxu0  ;;  %v632_v61 = vpop.f32.mrf.mxu1 }
 0x159   :  { %3404 = vst [vmem:[#allocation57_spill] sm:$0xff] %v2925_v25  ;;  %3405 = vst [vmem:[#allocation58_spill] sm:$0xff] %v2928_v30  ;;  %v2931_v6 = vadd.f32 %v519_v31, %v2788_v32  ;;  %v2934_v9 = vadd.f32 %v632_v61, %v2790_v35 }
 0x15a   :  { %v523_v10 = vpop.f32.mrf.mxu0  ;;  %v636_v13 = vpop.f32.mrf.mxu1 }
 0x15b   :  { %3406 = vst [vmem:[#allocation59_spill] sm:$0xff] %v2931_v6  ;;  %3407 = vst [vmem:[#allocation60_spill] sm:$0xff] %v2934_v9  ;;  %v2937_v14 = vadd.f32 %v523_v10, %v2784_v28  ;;  %v2940_v0 = vadd.f32 %v636_v13, %v2786_v29  ;;  %v454_v13 = vadd.f32 %v2765_v15, %v2784_v28 }
 0x15c   :  { %v525_v21 = vpop.f32.mrf.mxu0  ;;  %v638_v25 = vpop.f32.mrf.mxu1 }
 0x15d   :  { %3408 = vst [vmem:[#allocation61_spill] sm:$0xff] %v2937_v14  ;;  %3409 = vst [vmem:[#allocation62_spill] sm:$0xff] %v2940_v0  ;;  %v2943_v24 = vadd.f32 %v525_v21, %v2788_v32  ;;  %v2946_v30 = vadd.f32 %v638_v25, %v2790_v35 }
 0x15e   :  { %v527_v31 = vpop.f32.mrf.mxu0  ;;  %v640_v6 = vpop.f32.mrf.mxu1 }
 0x15f   :  { %3410 = vst [vmem:[#allocation63_spill] sm:$0xff] %v2943_v24  ;;  %3411 = vst [vmem:[#allocation64_spill] sm:$0xff] %v2946_v30  ;;  %v2949_v61 = vadd.f32 %v527_v31, %v2784_v28  ;;  %v2952_v9 = vadd.f32 %v640_v6, %v2786_v29  ;;  %v456_v31 = vadd.f32 %v2769_v17, %v2788_v32 }
 0x160   :  { %v529_v10 = vpop.f32.mrf.mxu0  ;;  %v642_v14 = vpop.f32.mrf.mxu1  ;;  %v567_v6 = vadd.f32 %v2767_v16, %v2786_v29  ;;  %v458_v24 = vadd.f32 %v2776_v22, %v2784_v28  ;;  %v571_v22 = vadd.f32 %v2778_v23, %v2786_v29 }
 0x161   :  { %3412 = vst [vmem:[#allocation65_spill] sm:$0xff] %v2949_v61  ;;  %3413 = vst [vmem:[#allocation66_spill] sm:$0xff] %v2952_v9  ;;  %v2957_v0 = vadd.f32 %v529_v10, %v2788_v32  ;;  %v2960_v21 = vadd.f32 %v642_v14, %v2790_v35  ;;  %v460_v14 = vadd.f32 %v2780_v26, %v2788_v32 }
 0x162   :  { %v840_v25 = vpop.f32.mrf.mxu0  ;;  %v883_v30 = vpop.f32.mrf.mxu1  ;;  %v573_v32 = vadd.f32 %v2782_v27, %v2790_v35 }
 0x163   :  { %3414 = vst [vmem:[#allocation67_spill] sm:$0xff] %v2957_v0  ;;  %3415 = vst [vmem:[#allocation68_spill] sm:$0xff] %v2960_v21  ;;  %v892_v61 = vadd.f32 %v840_v25, %v454_v13  ;;  %v894_v10 = vadd.f32 %v883_v30, %v567_v6 }
 0x164   :  { %v842_v9 = vpop.f32.mrf.mxu0  ;;  %v885_v0 = vpop.f32.mrf.mxu1 }
 0x165   :  { %v900_v15 = vmul.f32 0.5, %v892_v61  ;;  %v893_v20 = vadd.f32 %v842_v9, %v456_v31  ;;  %v569_v9 = vadd.f32 %v2771_v18, %v2790_v35 }
 0x166   :  { %v844_v8 = vpop.f32.mrf.mxu0  ;;  %v887_v16 = vpop.f32.mrf.mxu1 }
 0x167   :  { %2217 = vtanh.f32 %v900_v15  ;;  %v908_v21 = vmul.f32 0.5, %v893_v20  ;;  %v896_v12 = vadd.f32 %v844_v8, %v458_v24  ;;  %v898_v30 = vadd.f32 %v887_v16, %v571_v22 }
 0x168   :  { %v846_v17 = vpop.f32.mrf.mxu0  ;;  %v889_v26 = vpop.f32.mrf.mxu1  ;;  %v895_v8 = vadd.f32 %v885_v0, %v569_v9  ;;  %v102_v0 = vld [vmem:[#allocation9 + $0x8] sm:$0xff] }
 0x169   :  { %2219 = vtanh.f32 %v908_v21  ;;  %v901_v13 = vmul.f32 0.5, %v896_v12  ;;  %v897_v25 = vadd.f32 %v846_v17, %v460_v14  ;;  %v899_v12 = vadd.f32 %v889_v26, %v573_v32 }
 0x16a   :  { %2221 = vtanh.f32 %v894_v10  ;;  %v918_v21 = vmul.f32 0.5, %v895_v8  ;;  %v101_v10 = vld [vmem:[#allocation9] sm:$0xff] }
 0x16b   :  { %2223 = vtanh.f32 %v901_v13  ;;  %v909_v28 = vmul.f32 0.5, %v897_v25  ;;  %v919_v6 = vmul.f32 0.5, %v899_v12 }
 0x16d   :  { %2225 = vtanh.f32 %v909_v28 }
 0x16e   :  { %2227 = vtanh.f32 %v898_v30 }
 0x16f   :  { %2229 = vtanh.f32 %v918_v21 }
 0x170   :  { %2231 = vtanh.f32 %v919_v6 }
 0x174   :  { %v2218_v20 = vpop.eup %2217 }
 0x175   :  { %v904_v24 = vmul.f32 0.5, %v2218_v20 }
 0x176   :  { %v2220_v61 = vpop.eup %2219 }
 0x177   :  { %v2222_v31 = vpop.eup %2221  ;;  %v906_v23 = vadd.f32 0.5, %v904_v24  ;;  %v912_v29 = vmul.f32 0.5, %v2220_v61 }
 0x178   :  { %v2224_v15 = vpop.eup %2223 }
 0x179   :  { %v914_v14 = vadd.f32 0.5, %v912_v29  ;;  %v928_v17 = vmul.f32 %v2222_v31, %v906_v23  ;;  %v905_v18 = vmul.f32 0.5, %v2224_v15  ;;  %v3416_v15 = vmov 0  }
 0x17a   :  { %v2226_v13 = vpop.eup %2225 }
 0x17b   :  { %v926_v25 = vmul.f32 %v914_v14, %v101_v10  ;;  %v907_v27 = vadd.f32 0.5, %v905_v18  ;;  %v913_v35 = vmul.f32 0.5, %v2226_v13  ;;  %v2228_v28 = vpop.eup %2227 }
 0x17c   :  { %v2230_v32 = vpop.eup %2229 }
 0x17d   :  { %v2976_v16 = vadd.f32 %v928_v17, %v926_v25  ;;  %v915_v22 = vadd.f32 0.5, %v913_v35  ;;  %v929_v9 = vmul.f32 %v2228_v28, %v907_v27  ;;  %v2232_v8 = vpop.eup %2231  ;;  %v922_v12 = vmul.f32 0.5, %v2230_v32 }
 0x17e   :  { %v923_v20 = vmul.f32 0.5, %v2232_v8 }
 0x17f   :  { %v927_v30 = vmul.f32 %v915_v22, %v102_v0  ;;  %2233 = vtanh.f32 %v2976_v16  ;;  %v924_v61 = vadd.f32 0.5, %v922_v12 }
 0x180   :  { %v925_v21 = vadd.f32 0.5, %v923_v20  ;;  %v3419_v20 = vld [vmem:[#allocation20_spill] sm:$0xff] }
 0x181   :  { %v2979_v26 = vadd.f32 %v929_v9, %v927_v30 }
 0x183   :  { %2235 = vtanh.f32 %v2979_v26 }
 0x18c   :  { %v2234_v24 = vpop.eup %2233 }
 0x18d   :  { %v934_v23 = vmul.f32 %v2234_v24, %v924_v61 }
 0x190   :  { %v2236_v31 = vpop.eup %2235 }
 0x191   :  { %v935_v29 = vmul.f32 %v2236_v31, %v925_v21 }
 0x193   :  { %v936_v6 = vpack.c.bf16 %v935_v29, %v934_v23 }
 0x195   :  { %2064 = vst [vmem:[#allocation13] sm:$0xff] %v936_v6   ;;  %979 = vmatmul.mubr.bf16.vlgmr.msra.gmra.mxu0 %v936_v6  ;;  %1022 = vmatmul.mubr.bf16.vlgmr.msra.gmra.mxu1 %v936_v6 }
 0x196   :  { %1088 = vmatpush1.bf16.msra.mxu0 %v2621_v36  ;;  %1131 = vmatpush1.bf16.msra.mxu1 %v2627_v38 }
 0x197   :  { %1089 = vmatprep.subr.bf16.mxu0 %v2624_v37  ;;  %1132 = vmatprep.subr.bf16.mxu1 %v2629_v39 }
 0x198   :  { %1119 = vmatprep.mubr.bf16.mxu0 %v3416_v15  ;;  %1162 = vmatprep.mubr.bf16.mxu1 %v3416_v15 }
 0x19a   :  { %1090 = vmatpush1.bf16.msra.mxu0 %v2633_v40  ;;  %1133 = vmatpush1.bf16.msra.mxu1 %v2640_v42 }
 0x19b   :  { %1091 = vmatprep.subr.bf16.mxu0 %v2637_v41  ;;  %1134 = vmatprep.subr.bf16.mxu1 %v2649_v46 }
 0x19e   :  { %1092 = vmatpush1.bf16.msra.mxu0 %v2645_v44  ;;  %1135 = vmatpush1.bf16.msra.mxu1 %v2652_v47 }
 0x19f   :  { %1093 = vmatprep.subr.bf16.mxu0 %v2647_v45  ;;  %1136 = vmatprep.subr.bf16.mxu1 %v2654_v48 }
 0x1a2   :  { %1094 = vmatpush1.bf16.msra.mxu0 %v2660_v49  ;;  %1137 = vmatpush1.bf16.msra.mxu1 %v2666_v51 }
 0x1a3   :  { %1095 = vmatprep.subr.bf16.mxu0 %v2662_v50  ;;  %1138 = vmatprep.subr.bf16.mxu1 %v2672_v54 }
 0x1a6   :  { %1096 = vmatpush1.bf16.msra.mxu0 %v2669_v53  ;;  %1139 = vmatpush1.bf16.msra.mxu1 %v2678_v56 }
 0x1a7   :  { %1097 = vmatprep.subr.bf16.mxu0 %v2676_v55  ;;  %1140 = vmatprep.subr.bf16.mxu1 %v2680_v57 }
 0x1aa   :  { %1098 = vmatpush1.bf16.msra.mxu0 %v2686_v58  ;;  %1141 = vmatpush1.bf16.msra.mxu1 %v2692_v60 }
 0x1ab   :  { %1099 = vmatprep.subr.bf16.mxu0 %v2690_v59  ;;  %1142 = vmatprep.subr.bf16.mxu1 %v2698_v63 }
 0x1ae   :  { %1100 = vmatpush1.bf16.msra.mxu0 %v2696_v62  ;;  %1143 = vmatpush1.bf16.msra.mxu1 %v2704_v2 }
 0x1af   :  { %1101 = vmatprep.subr.bf16.mxu0 %v2702_v1  ;;  %1144 = vmatprep.subr.bf16.mxu1 %v2706_v3 }
 0x1b2   :  { %1102 = vmatpush1.bf16.msra.mxu0 %v2712_v4  ;;  %1145 = vmatpush1.bf16.msra.mxu1 %v2716_v5 }
 0x1b3   :  { %1228 = vmatprep.subr.bf16.mxu0 %v2617_v33  ;;  %1271 = vmatprep.subr.bf16.mxu1 %v2619_v34 }
 0x255   :  { %v980_v10 = vpop.f32.mrf.mxu0  ;;  %v1023_v14 = vpop.f32.mrf.mxu1 }
 0x256   :  { %v1032_v17 = vadd.f32 %v980_v10, %v2793_v43  ;;  %v1034_v35 = vadd.f32 %v1023_v14, %v2796_v52  ;;  %v3417_v43 = vld [vmem:[#allocation19_spill] sm:$0xff]  ;;  %v3418_v52 = vld [vmem:[#allocation18_spill] sm:$0xff] }
 0x257   :  { %v982_v18 = vpop.f32.mrf.mxu0  ;;  %v1025_v13 = vpop.f32.mrf.mxu1 }
 0x258   :  { %v1040_v25 = vmul.f32 0.5, %v1032_v17  ;;  %v1033_v27 = vadd.f32 %v982_v18, %v2799_v7  ;;  %v1035_v12 = vadd.f32 %v1025_v13, %v3418_v52 }
 0x259   :  { %v984_v0 = vpop.f32.mrf.mxu0  ;;  %v1027_v30 = vpop.f32.mrf.mxu1 }
 0x25a   :  { %2237 = vtanh.f32 %v1040_v25  ;;  %v1048_v22 = vmul.f32 0.5, %v1033_v27  ;;  %v1036_v28 = vadd.f32 %v984_v0, %v2805_v11  ;;  %v1038_v32 = vadd.f32 %v1027_v30, %v3417_v43 }
 0x25b   :  { %v986_v33 = vpop.f32.mrf.mxu0  ;;  %v1029_v7 = vpop.f32.mrf.mxu1  ;;  %v1058_v31 = vmul.f32 0.5, %v1035_v12 }
 0x25c   :  { %2239 = vtanh.f32 %v1048_v22  ;;  %v1041_v34 = vmul.f32 0.5, %v1036_v28  ;;  %v1037_v9 = vadd.f32 %v986_v33, %v2811_v19  ;;  %v1039_v24 = vadd.f32 %v1029_v7, %v3419_v20 }
 0x25d   :  { %2241 = vtanh.f32 %v1034_v35 }
 0x25e   :  { %2243 = vtanh.f32 %v1041_v34  ;;  %v1049_v8 = vmul.f32 0.5, %v1037_v9  ;;  %v1059_v19 = vmul.f32 0.5, %v1039_v24 }
 0x260   :  { %2245 = vtanh.f32 %v1049_v8 }
 0x261   :  { %2247 = vtanh.f32 %v1038_v32 }
 0x262   :  { %2249 = vtanh.f32 %v1058_v31 }
 0x263   :  { %2251 = vtanh.f32 %v1059_v19 }
 0x267   :  { %v2238_v61 = vpop.eup %2237 }
 0x268   :  { %v1044_v11 = vmul.f32 0.5, %v2238_v61 }
 0x269   :  { %v2240_v21 = vpop.eup %2239 }
 0x26a   :  { %v2242_v23 = vpop.eup %2241  ;;  %v1046_v29 = vadd.f32 0.5, %v1044_v11  ;;  %v1052_v6 = vmul.f32 0.5, %v2240_v21  ;;  %v3427_v21 = vld [vmem:[#allocation28_spill] sm:$0xff] }
 0x26b   :  { %v2244_v10 = vpop.eup %2243 }
 0x26c   :  { %v1054_v14 = vadd.f32 0.5, %v1052_v6  ;;  %v1068_v17 = vmul.f32 %v2242_v23, %v1046_v29  ;;  %v1045_v18 = vmul.f32 0.5, %v2244_v10 }
 0x26d   :  { %v2246_v25 = vpop.eup %2245 }
 0x26e   :  { %v1066_v27 = vmul.f32 %v1054_v14, %v2976_v16  ;;  %v1047_v35 = vadd.f32 0.5, %v1045_v18  ;;  %v1053_v13 = vmul.f32 0.5, %v2246_v25  ;;  %v2248_v0 = vpop.eup %2247 }
 0x26f   :  { %v2250_v9 = vpop.eup %2249 }
 0x270   :  { %v3025_v22 = vadd.f32 %v1068_v17, %v1066_v27  ;;  %v1055_v28 = vadd.f32 0.5, %v1053_v13  ;;  %v1069_v30 = vmul.f32 %v2248_v0, %v1047_v35  ;;  %v2252_v43 = vpop.eup %2251  ;;  %v1062_v32 = vmul.f32 0.5, %v2250_v9 }
 0x271   :  { %v1063_v16 = vmul.f32 0.5, %v2252_v43 }
 0x272   :  { %v1067_v33 = vmul.f32 %v1055_v28, %v2979_v26  ;;  %2253 = vtanh.f32 %v3025_v22  ;;  %v1064_v7 = vadd.f32 0.5, %v1062_v32  ;;  %v3426_v26 = vld [vmem:[#allocation24_spill] sm:$0xff] }
 0x273   :  { %v1065_v52 = vadd.f32 0.5, %v1063_v16 }
 0x274   :  { %v3029_v34 = vadd.f32 %v1069_v30, %v1067_v33 }
 0x276   :  { %2255 = vtanh.f32 %v3029_v34 }
 0x27f   :  { %v2254_v8 = vpop.eup %2253 }
 0x280   :  { %v1074_v20 = vmul.f32 %v2254_v8, %v1064_v7 }
 0x283   :  { %v2256_v12 = vpop.eup %2255 }
 0x284   :  { %v1075_v24 = vmul.f32 %v2256_v12, %v1065_v52 }
 0x286   :  { %v1076_v61 = vpack.c.bf16 %v1075_v24, %v1074_v20 }
 0x288   :  { %2069 = vst [vmem:[#allocation13 + $0x8] sm:$0xff] %v1076_v61   ;;  %1120 = vmatmul.mubr.bf16.vlgmr.msra.gmra.mxu0 %v1076_v61  ;;  %1163 = vmatmul.mubr.bf16.vlgmr.msra.gmra.mxu1 %v1076_v61 }
 0x289   :  { %1229 = vmatpush1.bf16.msra.mxu0 %v2621_v36  ;;  %1272 = vmatpush1.bf16.msra.mxu1 %v2627_v38  ;;  %v3064_v36 = vld [vmem:[#allocation12 + $0xe4] ss:$16 sps:$4 sm:$0xff]  }
 0x28a   :  { %1230 = vmatprep.subr.bf16.mxu0 %v2624_v37  ;;  %1273 = vmatprep.subr.bf16.mxu1 %v2629_v39  ;;  %v3067_v37 = vld [vmem:[#allocation12 + $0xec] ss:$16 sps:$4 sm:$0xff]  }
 0x28b   :  { %1260 = vmatprep.mubr.bf16.mxu0 %v3416_v15  ;;  %1303 = vmatprep.mubr.bf16.mxu1 %v3416_v15 }
 0x28d   :  { %1231 = vmatpush1.bf16.msra.mxu0 %v2633_v40  ;;  %1274 = vmatpush1.bf16.msra.mxu1 %v2640_v42  ;;  %v3420_v40 = vld [vmem:[#allocation21_spill] sm:$0xff] }
 0x28e   :  { %1232 = vmatprep.subr.bf16.mxu0 %v2637_v41  ;;  %1275 = vmatprep.subr.bf16.mxu1 %v2649_v46  ;;  %v3421_v46 = vld [vmem:[#allocation23_spill] sm:$0xff] }
 0x291   :  { %1233 = vmatpush1.bf16.msra.mxu0 %v2645_v44  ;;  %1276 = vmatpush1.bf16.msra.mxu1 %v2652_v47 }
 0x292   :  { %1234 = vmatprep.subr.bf16.mxu0 %v2647_v45  ;;  %1277 = vmatprep.subr.bf16.mxu1 %v2654_v48  ;;  %v3422_v48 = vld [vmem:[#allocation22_spill] sm:$0xff] }
 0x295   :  { %1235 = vmatpush1.bf16.msra.mxu0 %v2660_v49  ;;  %1278 = vmatpush1.bf16.msra.mxu1 %v2666_v51 }
 0x296   :  { %1236 = vmatprep.subr.bf16.mxu0 %v2662_v50  ;;  %1279 = vmatprep.subr.bf16.mxu1 %v2672_v54 }
 0x299   :  { %1237 = vmatpush1.bf16.msra.mxu0 %v2669_v53  ;;  %1280 = vmatpush1.bf16.msra.mxu1 %v2678_v56  ;;  %v3423_v53 = vld [vmem:[#allocation25_spill] sm:$0xff] }
 0x29a   :  { %1238 = vmatprep.subr.bf16.mxu0 %v2676_v55  ;;  %1281 = vmatprep.subr.bf16.mxu1 %v2680_v57 }
 0x29d   :  { %1239 = vmatpush1.bf16.msra.mxu0 %v2686_v58  ;;  %1282 = vmatpush1.bf16.msra.mxu1 %v2692_v60  ;;  %v3424_v58 = vld [vmem:[#allocation27_spill] sm:$0xff]  ;;  %v3425_v60 = vld [vmem:[#allocation26_spill] sm:$0xff] }
 0x29e   :  { %1240 = vmatprep.subr.bf16.mxu0 %v2690_v59  ;;  %1283 = vmatprep.subr.bf16.mxu1 %v2698_v63 }
 0x2a1   :  { %1241 = vmatpush1.bf16.msra.mxu0 %v2696_v62  ;;  %1284 = vmatpush1.bf16.msra.mxu1 %v2704_v2 }
 0x2a2   :  { %1242 = vmatprep.subr.bf16.mxu0 %v2702_v1  ;;  %1285 = vmatprep.subr.bf16.mxu1 %v2706_v3 }
 0x2a5   :  { %1243 = vmatpush1.bf16.msra.mxu0 %v2712_v4  ;;  %1286 = vmatpush1.bf16.msra.mxu1 %v2716_v5 }
 0x2a6   :  { %1369 = vmatprep.subr.bf16.mxu0 %v3064_v36  ;;  %1412 = vmatprep.subr.bf16.mxu1 %v3067_v37 }
 0x348   :  { %v1121_v38 = vpop.f32.mrf.mxu0  ;;  %v1164_v39 = vpop.f32.mrf.mxu1 }
 0x349   :  { %v1173_v41 = vadd.f32 %v1121_v38, %v3420_v40  ;;  %v1175_v49 = vadd.f32 %v1164_v39, %v3422_v48  ;;  %v3103_v48 = vld [vmem:[#allocation12 + $0xc8] ss:$16 sps:$4 sm:$0xff]  }
 0x34a   :  { %v1123_v42 = vpop.f32.mrf.mxu0  ;;  %v1166_v44 = vpop.f32.mrf.mxu1 }
 0x34b   :  { %v1181_v45 = vmul.f32 0.5, %v1173_v41  ;;  %v1174_v47 = vadd.f32 %v1123_v42, %v3421_v46  ;;  %v1176_v11 = vadd.f32 %v1166_v44, %v3426_v26  ;;  %v3089_v44 = vld [vmem:[#allocation12 + $0xe8] ss:$16 sps:$4 sm:$0xff]   ;;  %v3095_v46 = vld [vmem:[#allocation12 + $0xcc] ss:$16 sps:$4 sm:$0xff]  }
 0x34c   :  { %v1125_v50 = vpop.f32.mrf.mxu0  ;;  %v1168_v55 = vpop.f32.mrf.mxu1  ;;  %v3148_v26 = vld [vmem:[#allocation12 + $0x40] ss:$16 sps:$4 sm:$0xff]  }
 0x34d   :  { %2257 = vtanh.f32 %v1181_v45  ;;  %v1189_v51 = vmul.f32 0.5, %v1174_v47  ;;  %v1177_v54 = vadd.f32 %v1125_v50, %v3423_v53  ;;  %v1179_v62 = vadd.f32 %v1168_v55, %v3425_v60  ;;  %v3092_v45 = vld [vmem:[#allocation12 + $0xc4] ss:$16 sps:$4 sm:$0xff]   ;;  %v3100_v47 = vld [vmem:[#allocation12 + $0xc0] ss:$16 sps:$4 sm:$0xff]  }
 0x34e   :  { %v1127_v56 = vpop.f32.mrf.mxu0  ;;  %v1170_v1 = vpop.f32.mrf.mxu1  ;;  %v1199_v19 = vmul.f32 0.5, %v1176_v11  ;;  %v3109_v50 = vld [vmem:[#allocation12 + $0xac] ss:$16 sps:$4 sm:$0xff]   ;;  %v3115_v53 = vld [vmem:[#allocation12 + $0xa8] ss:$16 sps:$4 sm:$0xff]  }
 0x34f   :  { %2259 = vtanh.f32 %v1189_v51  ;;  %v1182_v57 = vmul.f32 0.5, %v1177_v54  ;;  %v1178_v59 = vadd.f32 %v1127_v56, %v3424_v58  ;;  %v1180_v31 = vadd.f32 %v1170_v1, %v3427_v21  ;;  %v3112_v51 = vld [vmem:[#allocation12 + $0xa0] ss:$16 sps:$4 sm:$0xff]   ;;  %v3118_v54 = vld [vmem:[#allocation12 + $0x84] ss:$16 sps:$4 sm:$0xff]  }
 0x350   :  { %2261 = vtanh.f32 %v1175_v49  ;;  %v3106_v49 = vld [vmem:[#allocation12 + $0xa4] ss:$16 sps:$4 sm:$0xff]   ;;  %v3121_v55 = vld [vmem:[#allocation12 + $0x8c] ss:$16 sps:$4 sm:$0xff]   ;;  %v3124_v56 = vld [vmem:[#allocation12 + $0x80] ss:$16 sps:$4 sm:$0xff]  }
 0x351   :  { %2263 = vtanh.f32 %v1182_v57  ;;  %v1190_v63 = vmul.f32 0.5, %v1178_v59  ;;  %v1200_v18 = vmul.f32 0.5, %v1180_v31  ;;  %v3127_v57 = vld [vmem:[#allocation12 + $0x88] ss:$16 sps:$4 sm:$0xff]   ;;  %v3130_v58 = vld [vmem:[#allocation12 + $0x64] ss:$16 sps:$4 sm:$0xff]  }
 0x352   :  { %v3133_v59 = vld [vmem:[#allocation12 + $0x6c] ss:$16 sps:$4 sm:$0xff]   ;;  %v3136_v60 = vld [vmem:[#allocation12 + $0x60] ss:$16 sps:$4 sm:$0xff]   ;;  %v3151_v11 = vld [vmem:[#allocation12 + $0x48] ss:$16 sps:$4 sm:$0xff]  }
 0x353   :  { %2265 = vtanh.f32 %v1190_v63  ;;  %v3142_v63 = vld [vmem:[#allocation12 + $0x44] ss:$16 sps:$4 sm:$0xff]   ;;  %v3145_v1 = vld [vmem:[#allocation12 + $0x4c] ss:$16 sps:$4 sm:$0xff]  }
 0x354   :  { %2267 = vtanh.f32 %v1179_v62  ;;  %v3139_v62 = vld [vmem:[#allocation12 + $0x68] ss:$16 sps:$4 sm:$0xff]   ;;  %v3154_v21 = vld [vmem:[#allocation12 + $0x24] ss:$16 sps:$4 sm:$0xff]   ;;  %v3157_v31 = vld [vmem:[#allocation12 + $0x2c] ss:$16 sps:$4 sm:$0xff]  }
 0x355   :  { %2269 = vtanh.f32 %v1199_v19 }
 0x356   :  { %2271 = vtanh.f32 %v1200_v18 }
 0x35a   :  { %v2258_v23 = vpop.eup %2257 }
 0x35b   :  { %v1185_v29 = vmul.f32 0.5, %v2258_v23  ;;  %v3160_v23 = vld [vmem:[#allocation12 + $0x20] ss:$16 sps:$4 sm:$0xff]  }
 0x35c   :  { %v2260_v6 = vpop.eup %2259 }
 0x35d   :  { %v2262_v10 = vpop.eup %2261  ;;  %v1187_v14 = vadd.f32 0.5, %v1185_v29  ;;  %v1193_v17 = vmul.f32 0.5, %v2260_v6  ;;  %v3164_v29 = vld [vmem:[#allocation12 + $0x4] ss:$16 sps:$4 sm:$0xff]  }
 0x35e   :  { %v2264_v25 = vpop.eup %2263 }
 0x35f   :  { %v1195_v27 = vadd.f32 0.5, %v1193_v17  ;;  %v1209_v35 = vmul.f32 %v2262_v10, %v1187_v14  ;;  %v1186_v13 = vmul.f32 0.5, %v2264_v25  ;;  %v3428_v10 = vld [vmem:[#allocation29_spill] sm:$0xff]  ;;  %v3429_v25 = vld [vmem:[#allocation31_spill] sm:$0xff] }
 0x360   :  { %v2266_v0 = vpop.eup %2265 }
 0x361   :  { %v1207_v28 = vmul.f32 %v1195_v27, %v3025_v22  ;;  %v1188_v30 = vadd.f32 0.5, %v1186_v13  ;;  %v1194_v33 = vmul.f32 0.5, %v2266_v0  ;;  %v2268_v9 = vpop.eup %2267  ;;  %v3431_v0 = vld [vmem:[#allocation33_spill] sm:$0xff] }
 0x362   :  { %v2270_v52 = vpop.eup %2269 }
 0x363   :  { %v3079_v43 = vadd.f32 %v1209_v35, %v1207_v28  ;;  %v1196_v32 = vadd.f32 0.5, %v1194_v33  ;;  %v1210_v16 = vmul.f32 %v2268_v9, %v1188_v30  ;;  %v2272_v12 = vpop.eup %2271  ;;  %v1203_v20 = vmul.f32 0.5, %v2270_v52  ;;  %v3430_v35 = vld [vmem:[#allocation30_spill] sm:$0xff]  ;;  %v3432_v9 = vld [vmem:[#allocation35_spill] sm:$0xff] }
 0x364   :  { %v1204_v22 = vmul.f32 0.5, %v2272_v12 }
 0x365   :  { %v1208_v8 = vmul.f32 %v1196_v32, %v3029_v34  ;;  %2273 = vtanh.f32 %v3079_v43  ;;  %v1205_v61 = vadd.f32 0.5, %v1203_v20  ;;  %v3086_v34 = vld [vmem:[#allocation12 + $0xe0] ss:$16 sps:$4 sm:$0xff]  }
 0x366   :  { %v1206_v38 = vadd.f32 0.5, %v1204_v22  ;;  %v3434_v20 = vld [vmem:[#allocation32_spill] sm:$0xff] }
 0x367   :  { %v3083_v7 = vadd.f32 %v1210_v16, %v1208_v8  ;;  %v3433_v16 = vld [vmem:[#allocation34_spill] sm:$0xff] }
 0x369   :  { %2275 = vtanh.f32 %v3083_v7 }
 0x372   :  { %v2274_v24 = vpop.eup %2273 }
 0x373   :  { %v1215_v40 = vmul.f32 %v2274_v24, %v1205_v61  ;;  %v3435_v24 = vld [vmem:[#allocation36_spill] sm:$0xff] }
 0x376   :  { %v2276_v39 = vpop.eup %2275 }
 0x377   :  { %v1216_v41 = vmul.f32 %v2276_v39, %v1206_v38 }
 0x379   :  { %v1217_v42 = vpack.c.bf16 %v1216_v41, %v1215_v40 }
 0x37b   :  { %2074 = vst [vmem:[#allocation13 + $0x10] sm:$0xff] %v1217_v42   ;;  %1261 = vmatmul.mubr.bf16.vlgmr.msra.gmra.mxu0 %v1217_v42  ;;  %1304 = vmatmul.mubr.bf16.vlgmr.msra.gmra.mxu1 %v1217_v42 }
 0x37c   :  { %1370 = vmatpush1.bf16.msra.mxu0 %v3086_v34  ;;  %1413 = vmatpush1.bf16.msra.mxu1 %v3089_v44 }
 0x37d   :  { %1371 = vmatprep.subr.bf16.mxu0 %v3092_v45  ;;  %1414 = vmatprep.subr.bf16.mxu1 %v3095_v46 }
 0x37e   :  { %1401 = vmatprep.mubr.bf16.mxu0 %v3416_v15  ;;  %1444 = vmatprep.mubr.bf16.mxu1 %v3416_v15 }
 0x380   :  { %1372 = vmatpush1.bf16.msra.mxu0 %v3100_v47  ;;  %1415 = vmatpush1.bf16.msra.mxu1 %v3103_v48 }
 0x381   :  { %1373 = vmatprep.subr.bf16.mxu0 %v3106_v49  ;;  %1416 = vmatprep.subr.bf16.mxu1 %v3109_v50 }
 0x384   :  { %1374 = vmatpush1.bf16.msra.mxu0 %v3112_v51  ;;  %1417 = vmatpush1.bf16.msra.mxu1 %v3115_v53 }
 0x385   :  { %1375 = vmatprep.subr.bf16.mxu0 %v3118_v54  ;;  %1418 = vmatprep.subr.bf16.mxu1 %v3121_v55 }
 0x388   :  { %1376 = vmatpush1.bf16.msra.mxu0 %v3124_v56  ;;  %1419 = vmatpush1.bf16.msra.mxu1 %v3127_v57 }
 0x389   :  { %1377 = vmatprep.subr.bf16.mxu0 %v3130_v58  ;;  %1420 = vmatprep.subr.bf16.mxu1 %v3133_v59 }
 0x38c   :  { %1378 = vmatpush1.bf16.msra.mxu0 %v3136_v60  ;;  %1421 = vmatpush1.bf16.msra.mxu1 %v3139_v62 }
 0x38d   :  { %1379 = vmatprep.subr.bf16.mxu0 %v3142_v63  ;;  %1422 = vmatprep.subr.bf16.mxu1 %v3145_v1 }
 0x390   :  { %1380 = vmatpush1.bf16.msra.mxu0 %v3148_v26  ;;  %1423 = vmatpush1.bf16.msra.mxu1 %v3151_v11 }
 0x391   :  { %1381 = vmatprep.subr.bf16.mxu0 %v3154_v21  ;;  %1424 = vmatprep.subr.bf16.mxu1 %v3157_v31 }
 0x394   :  { %1382 = vmatpush1.bf16.msra.mxu0 %v3160_v23  ;;  %1425 = vmatpush1.bf16.msra.mxu1 %v2704_v2 }
 0x395   :  { %1383 = vmatprep.subr.bf16.mxu0 %v3164_v29  ;;  %1426 = vmatprep.subr.bf16.mxu1 %v2706_v3 }
 0x398   :  { %1384 = vmatpush1.bf16.msra.mxu0 %v2712_v4  ;;  %1427 = vmatpush1.bf16.msra.mxu1 %v2716_v5 }
 0x399   :  { %1510 = vmatprep.subr.bf16.mxu0 %v3064_v36  ;;  %1553 = vmatprep.subr.bf16.mxu1 %v3067_v37 }
 0x43b   :  { %v1262_v6 = vpop.f32.mrf.mxu0  ;;  %v1305_v19 = vpop.f32.mrf.mxu1 }
 0x43c   :  { %v1314_v14 = vadd.f32 %v1262_v6, %v3428_v10  ;;  %v1316_v13 = vadd.f32 %v1305_v19, %v3430_v35 }
 0x43d   :  { %v1264_v17 = vpop.f32.mrf.mxu0  ;;  %v1307_v2 = vpop.f32.mrf.mxu1 }
 0x43e   :  { %v1322_v18 = vmul.f32 0.5, %v1314_v14  ;;  %v1315_v27 = vadd.f32 %v1264_v17, %v3429_v25  ;;  %v1317_v22 = vadd.f32 %v1307_v2, %v3434_v20 }
 0x43f   :  { %v1266_v3 = vpop.f32.mrf.mxu0  ;;  %v1309_v28 = vpop.f32.mrf.mxu1 }
 0x440   :  { %2277 = vtanh.f32 %v1322_v18  ;;  %v1330_v4 = vmul.f32 0.5, %v1315_v27  ;;  %v1318_v5 = vadd.f32 %v1266_v3, %v3431_v0  ;;  %v1320_v8 = vadd.f32 %v1309_v28, %v3433_v16 }
 0x441   :  { %v1268_v30 = vpop.f32.mrf.mxu0  ;;  %v1311_v12 = vpop.f32.mrf.mxu1  ;;  %v1340_v41 = vmul.f32 0.5, %v1317_v22 }
 0x442   :  { %2279 = vtanh.f32 %v1330_v4  ;;  %v1323_v33 = vmul.f32 0.5, %v1318_v5  ;;  %v1319_v32 = vadd.f32 %v1268_v30, %v3432_v9  ;;  %v1321_v61 = vadd.f32 %v1311_v12, %v3435_v24 }
 0x443   :  { %2281 = vtanh.f32 %v1316_v13 }
 0x444   :  { %2283 = vtanh.f32 %v1323_v33  ;;  %v1331_v52 = vmul.f32 0.5, %v1319_v32  ;;  %v1341_v10 = vmul.f32 0.5, %v1321_v61  ;;  %v3219_v61 = vld [vmem:[#allocation12 + $0xc] ss:$16 sps:$4 sm:$0xff]  }
 0x446   :  { %2285 = vtanh.f32 %v1331_v52 }
 0x447   :  { %2287 = vtanh.f32 %v1320_v8 }
 0x448   :  { %2289 = vtanh.f32 %v1340_v41 }
 0x449   :  { %2291 = vtanh.f32 %v1341_v10 }
 0x44d   :  { %v2278_v38 = vpop.eup %2277 }
 0x44e   :  { %v1326_v39 = vmul.f32 0.5, %v2278_v38  ;;  %v3222_v38 = vld [vmem:[#allocation12] ss:$16 sps:$4 sm:$0xff]  }
 0x44f   :  { %v2280_v40 = vpop.eup %2279 }
 0x450   :  { %v2282_v42 = vpop.eup %2281  ;;  %v1328_v6 = vadd.f32 0.5, %v1326_v39  ;;  %v1334_v19 = vmul.f32 0.5, %v2280_v40  ;;  %v3225_v39 = vld [vmem:[#allocation12 + $0x8] ss:$16 sps:$4 sm:$0xff]  }
 0x451   :  { %v2284_v14 = vpop.eup %2283 }
 0x452   :  { %v1336_v17 = vadd.f32 0.5, %v1334_v19  ;;  %v1350_v18 = vmul.f32 %v2282_v42, %v1328_v6  ;;  %v1327_v25 = vmul.f32 0.5, %v2284_v14  ;;  %v3436_v42 = vld [vmem:[#allocation37_spill] sm:$0xff] }
 0x453   :  { %v2286_v27 = vpop.eup %2285 }
 0x454   :  { %v1348_v35 = vmul.f32 %v1336_v17, %v3079_v43  ;;  %v1329_v13 = vadd.f32 0.5, %v1327_v25  ;;  %v1335_v2 = vmul.f32 0.5, %v2286_v27  ;;  %v2288_v3 = vpop.eup %2287  ;;  %v3437_v17 = vld [vmem:[#allocation39_spill] sm:$0xff]  ;;  %v3438_v25 = vld [vmem:[#allocation38_spill] sm:$0xff] }
 0x455   :  { %v2290_v33 = vpop.eup %2289 }
 0x456   :  { %v3181_v4 = vadd.f32 %v1350_v18, %v1348_v35  ;;  %v1337_v0 = vadd.f32 0.5, %v1335_v2  ;;  %v1351_v5 = vmul.f32 %v2288_v3, %v1329_v13  ;;  %v2292_v9 = vpop.eup %2291  ;;  %v1344_v32 = vmul.f32 0.5, %v2290_v33  ;;  %v3439_v2 = vld [vmem:[#allocation41_spill] sm:$0xff]  ;;  %v3440_v33 = vld [vmem:[#allocation43_spill] sm:$0xff] }
 0x457   :  { %v1345_v43 = vmul.f32 0.5, %v2292_v9 }
 0x458   :  { %v1349_v28 = vmul.f32 %v1337_v0, %v3083_v7  ;;  %2293 = vtanh.f32 %v3181_v4  ;;  %v1346_v8 = vadd.f32 0.5, %v1344_v32  ;;  %v3215_v7 = vld [vmem:[#allocation12 + $0x28] ss:$16 sps:$4 sm:$0xff]   ;;  %v3441_v32 = vld [vmem:[#allocation42_spill] sm:$0xff] }
 0x459   :  { %v1347_v52 = vadd.f32 0.5, %v1345_v43 }
 0x45a   :  { %v3185_v30 = vadd.f32 %v1351_v5, %v1349_v28 }
 0x45c   :  { %2295 = vtanh.f32 %v3185_v30 }
 0x465   :  { %v2294_v16 = vpop.eup %2293 }
 0x466   :  { %v1356_v20 = vmul.f32 %v2294_v16, %v1346_v8 }
 0x469   :  { %v2296_v12 = vpop.eup %2295 }
 0x46a   :  { %v1357_v22 = vmul.f32 %v2296_v12, %v1347_v52  ;;  %v3442_v52 = vld [vmem:[#allocation40_spill] sm:$0xff] }
 0x46c   :  { %v1358_v24 = vpack.c.bf16 %v1357_v22, %v1356_v20  ;;  %v3443_v20 = vld [vmem:[#allocation44_spill] sm:$0xff] }
 0x46e   :  { %2079 = vst [vmem:[#allocation13 + $0x18] sm:$0xff] %v1358_v24   ;;  %1402 = vmatmul.mubr.bf16.vlgmr.msra.gmra.mxu0 %v1358_v24  ;;  %1445 = vmatmul.mubr.bf16.vlgmr.msra.gmra.mxu1 %v1358_v24 }
 0x46f   :  { %1511 = vmatpush1.bf16.msra.mxu0 %v3086_v34  ;;  %1554 = vmatpush1.bf16.msra.mxu1 %v3089_v44 }
 0x470   :  { %1512 = vmatprep.subr.bf16.mxu0 %v3092_v45  ;;  %1555 = vmatprep.subr.bf16.mxu1 %v3095_v46 }
 0x471   :  { %1542 = vmatprep.mubr.bf16.mxu0 %v3416_v15  ;;  %1585 = vmatprep.mubr.bf16.mxu1 %v3416_v15 }
 0x473   :  { %1513 = vmatpush1.bf16.msra.mxu0 %v3100_v47  ;;  %1556 = vmatpush1.bf16.msra.mxu1 %v3103_v48 }
 0x474   :  { %1514 = vmatprep.subr.bf16.mxu0 %v3106_v49  ;;  %1557 = vmatprep.subr.bf16.mxu1 %v3109_v50 }
 0x477   :  { %1515 = vmatpush1.bf16.msra.mxu0 %v3112_v51  ;;  %1558 = vmatpush1.bf16.msra.mxu1 %v3115_v53 }
 0x478   :  { %1516 = vmatprep.subr.bf16.mxu0 %v3118_v54  ;;  %1559 = vmatprep.subr.bf16.mxu1 %v3121_v55 }
 0x47b   :  { %1517 = vmatpush1.bf16.msra.mxu0 %v3124_v56  ;;  %1560 = vmatpush1.bf16.msra.mxu1 %v3127_v57 }
 0x47c   :  { %1518 = vmatprep.subr.bf16.mxu0 %v3130_v58  ;;  %1561 = vmatprep.subr.bf16.mxu1 %v3133_v59 }
 0x47f   :  { %1519 = vmatpush1.bf16.msra.mxu0 %v3136_v60  ;;  %1562 = vmatpush1.bf16.msra.mxu1 %v3139_v62 }
 0x480   :  { %1520 = vmatprep.subr.bf16.mxu0 %v3142_v63  ;;  %1563 = vmatprep.subr.bf16.mxu1 %v3145_v1 }
 0x483   :  { %1521 = vmatpush1.bf16.msra.mxu0 %v3148_v26  ;;  %1564 = vmatpush1.bf16.msra.mxu1 %v3151_v11 }
 0x484   :  { %1522 = vmatprep.subr.bf16.mxu0 %v3154_v21  ;;  %1565 = vmatprep.subr.bf16.mxu1 %v3157_v31 }
 0x487   :  { %1523 = vmatpush1.bf16.msra.mxu0 %v3160_v23  ;;  %1566 = vmatpush1.bf16.msra.mxu1 %v3215_v7 }
 0x488   :  { %1524 = vmatprep.subr.bf16.mxu0 %v3164_v29  ;;  %1567 = vmatprep.subr.bf16.mxu1 %v3219_v61 }
 0x48b   :  { %1525 = vmatpush1.bf16.msra.mxu0 %v3222_v38  ;;  %1568 = vmatpush1.bf16.msra.mxu1 %v3225_v39 }
 0x48c   :  { %1651 = vmatprep.subr.bf16.mxu0 %v3064_v36  ;;  %1694 = vmatprep.subr.bf16.mxu1 %v3067_v37 }
 0x52e   :  { %v1403_v40 = vpop.f32.mrf.mxu0  ;;  %v1446_v41 = vpop.f32.mrf.mxu1 }
 0x52f   :  { %v1455_v6 = vadd.f32 %v1403_v40, %v3436_v42  ;;  %v1457_v27 = vadd.f32 %v1446_v41, %v3438_v25 }
 0x530   :  { %v1405_v19 = vpop.f32.mrf.mxu0  ;;  %v1448_v10 = vpop.f32.mrf.mxu1 }
 0x531   :  { %v1463_v14 = vmul.f32 0.5, %v1455_v6  ;;  %v1456_v18 = vadd.f32 %v1405_v19, %v3437_v17  ;;  %v1458_v12 = vadd.f32 %v1448_v10, %v3442_v52 }
 0x532   :  { %v1407_v35 = vpop.f32.mrf.mxu0  ;;  %v1450_v0 = vpop.f32.mrf.mxu1 }
 0x533   :  { %2297 = vtanh.f32 %v1463_v14  ;;  %v1471_v13 = vmul.f32 0.5, %v1456_v18  ;;  %v1459_v3 = vadd.f32 %v1407_v35, %v3439_v2  ;;  %v1461_v43 = vadd.f32 %v1450_v0, %v3441_v32 }
 0x534   :  { %v1409_v5 = vpop.f32.mrf.mxu0  ;;  %v1452_v8 = vpop.f32.mrf.mxu1  ;;  %v1481_v42 = vmul.f32 0.5, %v1458_v12 }
 0x535   :  { %2299 = vtanh.f32 %v1471_v13  ;;  %v1464_v28 = vmul.f32 0.5, %v1459_v3  ;;  %v1460_v9 = vadd.f32 %v1409_v5, %v3440_v33  ;;  %v1462_v22 = vadd.f32 %v1452_v8, %v3443_v20 }
 0x536   :  { %2301 = vtanh.f32 %v1457_v27 }
 0x537   :  { %2303 = vtanh.f32 %v1464_v28  ;;  %v1472_v16 = vmul.f32 0.5, %v1460_v9  ;;  %v1482_v17 = vmul.f32 0.5, %v1462_v22 }
 0x539   :  { %2305 = vtanh.f32 %v1472_v16 }
 0x53a   :  { %2307 = vtanh.f32 %v1461_v43 }
 0x53b   :  { %2309 = vtanh.f32 %v1481_v42 }
 0x53c   :  { %2311 = vtanh.f32 %v1482_v17 }
 0x540   :  { %v2298_v24 = vpop.eup %2297 }
 0x541   :  { %v1467_v40 = vmul.f32 0.5, %v2298_v24 }
 0x542   :  { %v2300_v41 = vpop.eup %2299 }
 0x543   :  { %v2302_v6 = vpop.eup %2301  ;;  %v1469_v19 = vadd.f32 0.5, %v1467_v40  ;;  %v1475_v14 = vmul.f32 0.5, %v2300_v41 }
 0x544   :  { %v2304_v18 = vpop.eup %2303 }
 0x545   :  { %v1477_v25 = vadd.f32 0.5, %v1475_v14  ;;  %v1491_v27 = vmul.f32 %v2302_v6, %v1469_v19  ;;  %v1468_v35 = vmul.f32 0.5, %v2304_v18  ;;  %v3444_v6 = vld [vmem:[#allocation45_spill] sm:$0xff] }
 0x546   :  { %v2306_v13 = vpop.eup %2305 }
 0x547   :  { %v1489_v2 = vmul.f32 %v1477_v25, %v3181_v4  ;;  %v1470_v3 = vadd.f32 0.5, %v1468_v35  ;;  %v1476_v10 = vmul.f32 0.5, %v2306_v13  ;;  %v2308_v0 = vpop.eup %2307  ;;  %v3445_v25 = vld [vmem:[#allocation47_spill] sm:$0xff]  ;;  %v3446_v35 = vld [vmem:[#allocation46_spill] sm:$0xff] }
 0x548   :  { %v2310_v43 = vpop.eup %2309 }
 0x549   :  { %v3239_v5 = vadd.f32 %v1491_v27, %v1489_v2  ;;  %v1478_v28 = vadd.f32 0.5, %v1476_v10  ;;  %v1492_v33 = vmul.f32 %v2308_v0, %v1470_v3  ;;  %v2312_v16 = vpop.eup %2311  ;;  %v1485_v8 = vmul.f32 0.5, %v2310_v43  ;;  %v3447_v10 = vld [vmem:[#allocation49_spill] sm:$0xff]  ;;  %v3449_v43 = vld [vmem:[#allocation50_spill] sm:$0xff] }
 0x54a   :  { %v1486_v4 = vmul.f32 0.5, %v2312_v16 }
 0x54b   :  { %v1490_v9 = vmul.f32 %v1478_v28, %v3185_v30  ;;  %2313 = vtanh.f32 %v3239_v5  ;;  %v1487_v12 = vadd.f32 0.5, %v1485_v8 }
 0x54c   :  { %v1488_v20 = vadd.f32 0.5, %v1486_v4 }
 0x54d   :  { %v3243_v32 = vadd.f32 %v1492_v33, %v1490_v9  ;;  %v3448_v33 = vld [vmem:[#allocation51_spill] sm:$0xff] }
 0x54f   :  { %2315 = vtanh.f32 %v3243_v32 }
 0x558   :  { %v2314_v52 = vpop.eup %2313 }
 0x559   :  { %v1497_v24 = vmul.f32 %v2314_v52, %v1487_v12  ;;  %v3450_v52 = vld [vmem:[#allocation48_spill] sm:$0xff] }
 0x55c   :  { %v2316_v22 = vpop.eup %2315 }
 0x55d   :  { %v1498_v40 = vmul.f32 %v2316_v22, %v1488_v20  ;;  %v3451_v20 = vld [vmem:[#allocation52_spill] sm:$0xff] }
 0x55f   :  { %v1499_v41 = vpack.c.bf16 %v1498_v40, %v1497_v24 }
 0x561   :  { %2084 = vst [vmem:[#allocation13 + $0x20] sm:$0xff] %v1499_v41   ;;  %1543 = vmatmul.mubr.bf16.vlgmr.msra.gmra.mxu0 %v1499_v41  ;;  %1586 = vmatmul.mubr.bf16.vlgmr.msra.gmra.mxu1 %v1499_v41 }
 0x562   :  { %1652 = vmatpush1.bf16.msra.mxu0 %v3086_v34  ;;  %1695 = vmatpush1.bf16.msra.mxu1 %v3089_v44 }
 0x563   :  { %1653 = vmatprep.subr.bf16.mxu0 %v3092_v45  ;;  %1696 = vmatprep.subr.bf16.mxu1 %v3095_v46 }
 0x564   :  { %1683 = vmatprep.mubr.bf16.mxu0 %v3416_v15  ;;  %1726 = vmatprep.mubr.bf16.mxu1 %v3416_v15 }
 0x566   :  { %1654 = vmatpush1.bf16.msra.mxu0 %v3100_v47  ;;  %1697 = vmatpush1.bf16.msra.mxu1 %v3103_v48 }
 0x567   :  { %1655 = vmatprep.subr.bf16.mxu0 %v3106_v49  ;;  %1698 = vmatprep.subr.bf16.mxu1 %v3109_v50 }
 0x56a   :  { %1656 = vmatpush1.bf16.msra.mxu0 %v3112_v51  ;;  %1699 = vmatpush1.bf16.msra.mxu1 %v3115_v53 }
 0x56b   :  { %1657 = vmatprep.subr.bf16.mxu0 %v3118_v54  ;;  %1700 = vmatprep.subr.bf16.mxu1 %v3121_v55 }
 0x56e   :  { %1658 = vmatpush1.bf16.msra.mxu0 %v3124_v56  ;;  %1701 = vmatpush1.bf16.msra.mxu1 %v3127_v57 }
 0x56f   :  { %1659 = vmatprep.subr.bf16.mxu0 %v3130_v58  ;;  %1702 = vmatprep.subr.bf16.mxu1 %v3133_v59 }
 0x572   :  { %1660 = vmatpush1.bf16.msra.mxu0 %v3136_v60  ;;  %1703 = vmatpush1.bf16.msra.mxu1 %v3139_v62 }
 0x573   :  { %1661 = vmatprep.subr.bf16.mxu0 %v3142_v63  ;;  %1704 = vmatprep.subr.bf16.mxu1 %v3145_v1 }
 0x576   :  { %1662 = vmatpush1.bf16.msra.mxu0 %v3148_v26  ;;  %1705 = vmatpush1.bf16.msra.mxu1 %v3151_v11 }
 0x577   :  { %1663 = vmatprep.subr.bf16.mxu0 %v3154_v21  ;;  %1706 = vmatprep.subr.bf16.mxu1 %v3157_v31 }
 0x57a   :  { %1664 = vmatpush1.bf16.msra.mxu0 %v3160_v23  ;;  %1707 = vmatpush1.bf16.msra.mxu1 %v3215_v7 }
 0x57b   :  { %1665 = vmatprep.subr.bf16.mxu0 %v3164_v29  ;;  %1708 = vmatprep.subr.bf16.mxu1 %v3219_v61 }
 0x57e   :  { %1666 = vmatpush1.bf16.msra.mxu0 %v3222_v38  ;;  %1709 = vmatpush1.bf16.msra.mxu1 %v3225_v39 }
 0x57f   :  { %1792 = vmatprep.subr.bf16.mxu0 %v3064_v36  ;;  %1835 = vmatprep.subr.bf16.mxu1 %v3067_v37 }
 0x621   :  { %v1544_v30 = vpop.f32.mrf.mxu0  ;;  %v1587_v42 = vpop.f32.mrf.mxu1 }
 0x622   :  { %v1596_v19 = vadd.f32 %v1544_v30, %v3444_v6  ;;  %v1598_v13 = vadd.f32 %v1587_v42, %v3446_v35 }
 0x623   :  { %v1546_v14 = vpop.f32.mrf.mxu0  ;;  %v1589_v17 = vpop.f32.mrf.mxu1 }
 0x624   :  { %v1604_v18 = vmul.f32 0.5, %v1596_v19  ;;  %v1597_v27 = vadd.f32 %v1546_v14, %v3445_v25  ;;  %v1599_v12 = vadd.f32 %v1589_v17, %v3450_v52 }
 0x625   :  { %v1548_v2 = vpop.f32.mrf.mxu0  ;;  %v1591_v28 = vpop.f32.mrf.mxu1 }
 0x626   :  { %2317 = vtanh.f32 %v1604_v18  ;;  %v1612_v3 = vmul.f32 0.5, %v1597_v27  ;;  %v1600_v0 = vadd.f32 %v1548_v2, %v3447_v10  ;;  %v1602_v16 = vadd.f32 %v1591_v28, %v3449_v43 }
 0x627   :  { %v1550_v36 = vpop.f32.mrf.mxu0  ;;  %v1593_v4 = vpop.f32.mrf.mxu1  ;;  %v1622_v30 = vmul.f32 0.5, %v1599_v12 }
 0x628   :  { %2319 = vtanh.f32 %v1612_v3  ;;  %v1605_v37 = vmul.f32 0.5, %v1600_v0  ;;  %v1601_v9 = vadd.f32 %v1550_v36, %v3448_v33  ;;  %v1603_v22 = vadd.f32 %v1593_v4, %v3451_v20 }
 0x629   :  { %2321 = vtanh.f32 %v1598_v13 }
 0x62a   :  { %2323 = vtanh.f32 %v1605_v37  ;;  %v1613_v8 = vmul.f32 0.5, %v1601_v9  ;;  %v1623_v14 = vmul.f32 0.5, %v1603_v22 }
 0x62c   :  { %2325 = vtanh.f32 %v1613_v8 }
 0x62d   :  { %2327 = vtanh.f32 %v1602_v16 }
 0x62e   :  { %2329 = vtanh.f32 %v1622_v30 }
 0x62f   :  { %2331 = vtanh.f32 %v1623_v14 }
 0x633   :  { %v2318_v24 = vpop.eup %2317 }
 0x634   :  { %v1608_v40 = vmul.f32 0.5, %v2318_v24 }
 0x635   :  { %v2320_v41 = vpop.eup %2319 }
 0x636   :  { %v2322_v42 = vpop.eup %2321  ;;  %v1610_v6 = vadd.f32 0.5, %v1608_v40  ;;  %v1616_v19 = vmul.f32 0.5, %v2320_v41 }
 0x637   :  { %v2324_v18 = vpop.eup %2323 }
 0x638   :  { %v1618_v25 = vadd.f32 0.5, %v1616_v19  ;;  %v1632_v27 = vmul.f32 %v2322_v42, %v1610_v6  ;;  %v1609_v35 = vmul.f32 0.5, %v2324_v18 }
 0x639   :  { %v2326_v13 = vpop.eup %2325 }
 0x63a   :  { %v1630_v2 = vmul.f32 %v1618_v25, %v3239_v5  ;;  %v1611_v3 = vadd.f32 0.5, %v1609_v35  ;;  %v1617_v17 = vmul.f32 0.5, %v2326_v13  ;;  %v2328_v10 = vpop.eup %2327 }
 0x63b   :  { %v2330_v9 = vpop.eup %2329 }
 0x63c   :  { %v3289_v0 = vadd.f32 %v1632_v27, %v1630_v2  ;;  %v1619_v28 = vadd.f32 0.5, %v1617_v17  ;;  %v1633_v36 = vmul.f32 %v2328_v10, %v1611_v3  ;;  %v2332_v43 = vpop.eup %2331  ;;  %v1626_v16 = vmul.f32 0.5, %v2330_v9 }
 0x63d   :  { %v1627_v5 = vmul.f32 0.5, %v2332_v43 }
 0x63e   :  { %v1631_v37 = vmul.f32 %v1619_v28, %v3243_v32  ;;  %2333 = vtanh.f32 %v3289_v0  ;;  %v1628_v4 = vadd.f32 0.5, %v1626_v16 }
 0x63f   :  { %v1629_v52 = vadd.f32 0.5, %v1627_v5 }
 0x640   :  { %v3293_v33 = vadd.f32 %v1633_v36, %v1631_v37 }
 0x642   :  { %2335 = vtanh.f32 %v3293_v33 }
 0x64b   :  { %v2334_v8 = vpop.eup %2333 }
 0x64c   :  { %v1638_v20 = vmul.f32 %v2334_v8, %v1628_v4 }
 0x64f   :  { %v2336_v12 = vpop.eup %2335 }
 0x650   :  { %v1639_v22 = vmul.f32 %v2336_v12, %v1629_v52 }
 0x652   :  { %v1640_v24 = vpack.c.bf16 %v1639_v22, %v1638_v20 }
 0x654   :  { %2089 = vst [vmem:[#allocation13 + $0x28] sm:$0xff] %v1640_v24   ;;  %1684 = vmatmul.mubr.bf16.vlgmr.msra.gmra.mxu0 %v1640_v24  ;;  %1727 = vmatmul.mubr.bf16.vlgmr.msra.gmra.mxu1 %v1640_v24  ;;  %v3460_v24 = vld [vmem:[#allocation61_spill] sm:$0xff] }
 0x655   :  { %1793 = vmatpush1.bf16.msra.mxu0 %v3086_v34  ;;  %1836 = vmatpush1.bf16.msra.mxu1 %v3089_v44  ;;  %v3452_v44 = vld [vmem:[#allocation53_spill] sm:$0xff] }
 0x656   :  { %1794 = vmatprep.subr.bf16.mxu0 %v3092_v45  ;;  %1837 = vmatprep.subr.bf16.mxu1 %v3095_v46 }
 0x657   :  { %1824 = vmatprep.mubr.bf16.mxu0 %v3416_v15  ;;  %1867 = vmatprep.mubr.bf16.mxu1 %v3416_v15 }
 0x659   :  { %1795 = vmatpush1.bf16.msra.mxu0 %v3100_v47  ;;  %1838 = vmatpush1.bf16.msra.mxu1 %v3103_v48 }
 0x65a   :  { %1796 = vmatprep.subr.bf16.mxu0 %v3106_v49  ;;  %1839 = vmatprep.subr.bf16.mxu1 %v3109_v50  ;;  %v3453_v49 = vld [vmem:[#allocation55_spill] sm:$0xff] }
 0x65d   :  { %1797 = vmatpush1.bf16.msra.mxu0 %v3112_v51  ;;  %1840 = vmatpush1.bf16.msra.mxu1 %v3115_v53  ;;  %v3454_v51 = vld [vmem:[#allocation54_spill] sm:$0xff] }
 0x65e   :  { %1798 = vmatprep.subr.bf16.mxu0 %v3118_v54  ;;  %1841 = vmatprep.subr.bf16.mxu1 %v3121_v55 }
 0x661   :  { %1799 = vmatpush1.bf16.msra.mxu0 %v3124_v56  ;;  %1842 = vmatpush1.bf16.msra.mxu1 %v3127_v57  ;;  %v3455_v56 = vld [vmem:[#allocation57_spill] sm:$0xff] }
 0x662   :  { %1800 = vmatprep.subr.bf16.mxu0 %v3130_v58  ;;  %1843 = vmatprep.subr.bf16.mxu1 %v3133_v59 }
 0x665   :  { %1801 = vmatpush1.bf16.msra.mxu0 %v3136_v60  ;;  %1844 = vmatpush1.bf16.msra.mxu1 %v3139_v62  ;;  %v3456_v62 = vld [vmem:[#allocation59_spill] sm:$0xff] }
 0x666   :  { %1802 = vmatprep.subr.bf16.mxu0 %v3142_v63  ;;  %1845 = vmatprep.subr.bf16.mxu1 %v3145_v1  ;;  %v3457_v1 = vld [vmem:[#allocation58_spill] sm:$0xff] }
 0x669   :  { %1803 = vmatpush1.bf16.msra.mxu0 %v3148_v26  ;;  %1846 = vmatpush1.bf16.msra.mxu1 %v3151_v11 }
 0x66a   :  { %1804 = vmatprep.subr.bf16.mxu0 %v3154_v21  ;;  %1847 = vmatprep.subr.bf16.mxu1 %v3157_v31  ;;  %v3458_v31 = vld [vmem:[#allocation56_spill] sm:$0xff] }
 0x66d   :  { %1805 = vmatpush1.bf16.msra.mxu0 %v3160_v23  ;;  %1848 = vmatpush1.bf16.msra.mxu1 %v3215_v7 }
 0x66e   :  { %1806 = vmatprep.subr.bf16.mxu0 %v3164_v29  ;;  %1849 = vmatprep.subr.bf16.mxu1 %v3219_v61  ;;  %v3459_v29 = vld [vmem:[#allocation60_spill] sm:$0xff] }
 0x671   :  { %1807 = vmatpush1.bf16.msra.mxu0 %v3222_v38  ;;  %1850 = vmatpush1.bf16.msra.mxu1 %v3225_v39 }
 0x714   :  { %v1685_v15 = vpop.f32.mrf.mxu0  ;;  %v1728_v34 = vpop.f32.mrf.mxu1 }
 0x715   :  { %v1737_v45 = vadd.f32 %v1685_v15, %v3452_v44  ;;  %v1739_v53 = vadd.f32 %v1728_v34, %v3454_v51 }
 0x716   :  { %v1687_v46 = vpop.f32.mrf.mxu0  ;;  %v1730_v47 = vpop.f32.mrf.mxu1 }
 0x717   :  { %v1745_v48 = vmul.f32 0.5, %v1737_v45  ;;  %v1738_v50 = vadd.f32 %v1687_v46, %v3453_v49  ;;  %v1740_v23 = vadd.f32 %v1730_v47, %v3458_v31  ;;  %v3461_v46 = vld [vmem:[#allocation63_spill] sm:$0xff]  ;;  %v3467_v31 = vld [vmem:[#allocation68_spill] sm:$0xff] }
 0x718   :  { %v1689_v54 = vpop.f32.mrf.mxu0  ;;  %v1732_v58 = vpop.f32.mrf.mxu1 }
 0x719   :  { %2337 = vtanh.f32 %v1745_v48  ;;  %v1753_v55 = vmul.f32 0.5, %v1738_v50  ;;  %v1741_v57 = vadd.f32 %v1689_v54, %v3455_v56  ;;  %v1743_v26 = vadd.f32 %v1732_v58, %v3457_v1  ;;  %v3462_v48 = vld [vmem:[#allocation62_spill] sm:$0xff]  ;;  %v3464_v58 = vld [vmem:[#allocation67_spill] sm:$0xff]  ;;  %v3466_v1 = vld [vmem:[#allocation64_spill] sm:$0xff] }
 0x71a   :  { %v1691_v59 = vpop.f32.mrf.mxu0  ;;  %v1734_v21 = vpop.f32.mrf.mxu1  ;;  %v1763_v32 = vmul.f32 0.5, %v1740_v23 }
 0x71b   :  { %2339 = vtanh.f32 %v1753_v55  ;;  %v1746_v60 = vmul.f32 0.5, %v1741_v57  ;;  %v1742_v63 = vadd.f32 %v1691_v59, %v3456_v62  ;;  %v1744_v7 = vadd.f32 %v1734_v21, %v3459_v29 }
 0x71c   :  { %2341 = vtanh.f32 %v1739_v53  ;;  %v3463_v53 = vld [vmem:[#allocation65_spill] sm:$0xff] }
 0x71d   :  { %2343 = vtanh.f32 %v1746_v60  ;;  %v1754_v11 = vmul.f32 0.5, %v1742_v63  ;;  %v1764_v42 = vmul.f32 0.5, %v1744_v7  ;;  %v3465_v60 = vld [vmem:[#allocation66_spill] sm:$0xff] }
 0x71f   :  { %2345 = vtanh.f32 %v1754_v11 }
 0x720   :  { %2347 = vtanh.f32 %v1743_v26 }
 0x721   :  { %2349 = vtanh.f32 %v1763_v32 }
 0x722   :  { %2351 = vtanh.f32 %v1764_v42 }
 0x726   :  { %v2338_v61 = vpop.eup %2337 }
 0x727   :  { %v1749_v38 = vmul.f32 0.5, %v2338_v61 }
 0x728   :  { %v2340_v39 = vpop.eup %2339 }
 0x729   :  { %v2342_v40 = vpop.eup %2341  ;;  %v1751_v41 = vadd.f32 0.5, %v1749_v38  ;;  %v1757_v30 = vmul.f32 0.5, %v2340_v39 }
 0x72a   :  { %v2344_v6 = vpop.eup %2343 }
 0x72b   :  { %v1759_v19 = vadd.f32 0.5, %v1757_v30  ;;  %v1773_v14 = vmul.f32 %v2342_v40, %v1751_v41  ;;  %v1750_v18 = vmul.f32 0.5, %v2344_v6 }
 0x72c   :  { %v2346_v25 = vpop.eup %2345 }
 0x72d   :  { %v1771_v27 = vmul.f32 %v1759_v19, %v3289_v0  ;;  %v1752_v35 = vadd.f32 0.5, %v1750_v18  ;;  %v1758_v13 = vmul.f32 0.5, %v2346_v25  ;;  %v2348_v2 = vpop.eup %2347 }
 0x72e   :  { %v2350_v37 = vpop.eup %2349 }
 0x72f   :  { %v1775_v3 = vadd.f32 %v1773_v14, %v1771_v27  ;;  %v1760_v17 = vadd.f32 0.5, %v1758_v13  ;;  %v1774_v10 = vmul.f32 %v2348_v2, %v1752_v35  ;;  %v2352_v9 = vpop.eup %2351  ;;  %v1767_v43 = vmul.f32 0.5, %v2350_v37 }
 0x730   :  { %v1768_v16 = vmul.f32 0.5, %v2352_v9 }
 0x731   :  { %v1772_v28 = vmul.f32 %v1760_v17, %v3293_v33  ;;  %2353 = vtanh.f32 %v1775_v3  ;;  %v1769_v0 = vadd.f32 0.5, %v1767_v43 }
 0x732   :  { %v1770_v8 = vadd.f32 0.5, %v1768_v16 }
 0x733   :  { %v3338_v36 = vadd.f32 %v1774_v10, %v1772_v28 }
 0x735   :  { %2355 = vtanh.f32 %v3338_v36 }
 0x73e   :  { %v2354_v5 = vpop.eup %2353 }
 0x73f   :  { %v1779_v52 = vmul.f32 %v2354_v5, %v1769_v0 }
 0x742   :  { %v2356_v4 = vpop.eup %2355 }
 0x743   :  { %v1780_v12 = vmul.f32 %v2356_v4, %v1770_v8 }
 0x745   :  { %v1781_v20 = vpack.c.bf16 %v1780_v12, %v1779_v52 }
 0x747   :  { %2094 = vst [vmem:[#allocation13 + $0x30] sm:$0xff] %v1781_v20   ;;  %1825 = vmatmul.mubr.bf16.vlgmr.msra.gmra.mxu0 %v1781_v20  ;;  %1868 = vmatmul.mubr.bf16.vlgmr.msra.gmra.mxu1 %v1781_v20 }
 0x807   :  { %v1826_v33 = vpop.f32.mrf.mxu0  ;;  %v1869_v22 = vpop.f32.mrf.mxu1 }
 0x808   :  { %v1878_v15 = vadd.f32 %v1826_v33, %v3460_v24  ;;  %v1880_v49 = vadd.f32 %v1869_v22, %v3462_v48 }
 0x809   :  { %v1828_v34 = vpop.f32.mrf.mxu0  ;;  %v1871_v44 = vpop.f32.mrf.mxu1 }
 0x80a   :  { %v1886_v45 = vmul.f32 0.5, %v1878_v15  ;;  %v1879_v47 = vadd.f32 %v1828_v34, %v3461_v46  ;;  %v1881_v26 = vadd.f32 %v1871_v44, %v3466_v1 }
 0x80b   :  { %v1830_v50 = vpop.f32.mrf.mxu0  ;;  %v1873_v55 = vpop.f32.mrf.mxu1 }
 0x80c   :  { %2357 = vtanh.f32 %v1886_v45  ;;  %v1894_v51 = vmul.f32 0.5, %v1879_v47  ;;  %v1882_v54 = vadd.f32 %v1830_v50, %v3463_v53  ;;  %v1884_v62 = vadd.f32 %v1873_v55, %v3465_v60 }
 0x80d   :  { %v1832_v56 = vpop.f32.mrf.mxu0  ;;  %v1875_v11 = vpop.f32.mrf.mxu1  ;;  %v1904_v21 = vmul.f32 0.5, %v1881_v26 }
 0x80e   :  { %2359 = vtanh.f32 %v1894_v51  ;;  %v1887_v57 = vmul.f32 0.5, %v1882_v54  ;;  %v1883_v59 = vadd.f32 %v1832_v56, %v3464_v58  ;;  %v1885_v23 = vadd.f32 %v1875_v11, %v3467_v31 }
 0x80f   :  { %2361 = vtanh.f32 %v1880_v49 }
 0x810   :  { %2363 = vtanh.f32 %v1887_v57  ;;  %v1895_v63 = vmul.f32 0.5, %v1883_v59  ;;  %v1905_v40 = vmul.f32 0.5, %v1885_v23 }
 0x812   :  { %2365 = vtanh.f32 %v1895_v63 }
 0x813   :  { %2367 = vtanh.f32 %v1884_v62 }
 0x814   :  { %2369 = vtanh.f32 %v1904_v21 }
 0x815   :  { %2371 = vtanh.f32 %v1905_v40 }
 0x819   :  { %v2358_v29 = vpop.eup %2357 }
 0x81a   :  { %v1890_v7 = vmul.f32 0.5, %v2358_v29 }
 0x81b   :  { %v2360_v61 = vpop.eup %2359 }
 0x81c   :  { %v2362_v38 = vpop.eup %2361  ;;  %v1892_v39 = vadd.f32 0.5, %v1890_v7  ;;  %v1898_v32 = vmul.f32 0.5, %v2360_v61 }
 0x81d   :  { %v2364_v41 = vpop.eup %2363 }
 0x81e   :  { %v1900_v30 = vadd.f32 0.5, %v1898_v32  ;;  %v1914_v42 = vmul.f32 %v2362_v38, %v1892_v39  ;;  %v1891_v6 = vmul.f32 0.5, %v2364_v41 }
 0x81f   :  { %v2366_v19 = vpop.eup %2365 }
 0x820   :  { %v1912_v14 = vmul.f32 %v1900_v30, %v1775_v3  ;;  %v1893_v18 = vadd.f32 0.5, %v1891_v6  ;;  %v1899_v25 = vmul.f32 0.5, %v2366_v19  ;;  %v2368_v27 = vpop.eup %2367 }
 0x821   :  { %v2370_v28 = vpop.eup %2369 }
 0x822   :  { %v1916_v35 = vadd.f32 %v1914_v42, %v1912_v14  ;;  %v1901_v13 = vadd.f32 0.5, %v1899_v25  ;;  %v1915_v2 = vmul.f32 %v2368_v27, %v1893_v18  ;;  %v1908_v37 = vmul.f32 0.5, %v2370_v28  ;;  %v2372_v9 = vpop.eup %2371 }
 0x823   :  { %v1909_v16 = vmul.f32 0.5, %v2372_v9 }
 0x824   :  { %2373 = vtanh.f32 %v1916_v35  ;;  %v1913_v17 = vmul.f32 %v1901_v13, %v3338_v36  ;;  %v1910_v43 = vadd.f32 0.5, %v1908_v37 }
 0x825   :  { %v1911_v3 = vadd.f32 0.5, %v1909_v16 }
 0x826   :  { %v1917_v10 = vadd.f32 %v1915_v2, %v1913_v17 }
 0x828   :  { %2375 = vtanh.f32 %v1917_v10 }
 0x831   :  { %v2374_v5 = vpop.eup %2373 }
 0x832   :  { %v1920_v0 = vmul.f32 %v2374_v5, %v1910_v43 }
 0x835   :  { %v2376_v8 = vpop.eup %2375 }
 0x836   :  { %v1921_v4 = vmul.f32 %v2376_v8, %v1911_v3 }
 0x838   :  { %v2098_v52 = vpack.c.bf16 %v1921_v4, %v1920_v0 }
 0x83a   :  { %2099 = vst [vmem:[#allocation13 + $0x38] sm:$0xff] %v2098_v52  }
 0x83b   :  { %2520 = shalt.err (!%p2517_p1)
}
 0x83c   :  { %1948 = dma.vmem_to_hbm [thread:$0]  %s1943_s24, 1024, %s3362_s6, [#allocation6], %s2544_s13, %s2544_s13, %s2545_s14  }
 0x83d   :  { %2535 = dma.done.wait [#allocation6], 1024  }
 0x83e   :  { %2536 = vsyncadd [#allocation6], 4294966272 }
 0x83f   :  { %1952 = vsyncpa [#allocation5], 1 }
 0x840   :  { %1953 = vsyncpa [#allocation8], 1 }
 0x841   :  { %1954 = vsyncpa [#allocation11], 1 }
 0x842   :  { %1955 = vsyncpa [#allocation6], 1 }

</bundles_post_ra>
